<compile_context>
chip_gen: v6e
topology: v6e:2x2x1
jax: 0.10.0
libtpu: 0.0.40
codegen_flags: <defaults>
</compile_context>

<pallas_src>
import functools

import jax
import jax.numpy as jnp
from jax.experimental import pallas as pl
from jax.experimental.pallas import tpu as pltpu


def _round_up(x, m):
    return (x + m - 1) // m * m


# ----------------------------------------------------------------------------
# Exact GELU (erf-based, matching nn.GELU() default) from Mosaic-safe ops.
# ----------------------------------------------------------------------------
_SQRT_HALF = 0.7071067811865476


def _erf_approx(z):
    # Abramowitz & Stegun 7.1.26, |error| < 1.5e-7 (uses only abs/exp/where).
    a = jnp.abs(z)
    t = 1.0 / (1.0 + 0.3275911 * a)
    poly = t * (0.254829592 + t * (-0.284496736 + t * (1.421413741
             + t * (-1.453152027 + t * 1.061405429))))
    e = 1.0 - poly * jnp.exp(-a * a)
    return jnp.where(z < 0.0, -e, e)


def _gelu_exact(x):
    return 0.5 * x * (1.0 + _erf_approx(x * _SQRT_HALF))


# ----------------------------------------------------------------------------
# Fused matmul + bias (+ GELU) kernel: used for every conv (via im2col / 1x1).
# ----------------------------------------------------------------------------
def _matmul_bias_act_kernel(x_ref, w_ref, b_ref, o_ref, *, apply_gelu):
    acc = jnp.dot(x_ref[...], w_ref[...], preferred_element_type=jnp.float32)
    acc = acc + b_ref[...]                       # (TILE_M, N) + (1, N)
    if apply_gelu:
        acc = _gelu_exact(acc)
    o_ref[...] = acc.astype(o_ref.dtype)


def _matmul_bias_act(x2d, w2d, bias, *, apply_gelu):
    """x2d: (M, K), w2d: (K, N), bias: (N,) -> (M, N)."""
    M, K = x2d.shape
    Kw, N = w2d.shape
    assert K == Kw
    tile_m = min(256, _round_up(M, 8))           # row tile, multiple of 8
    m_pad = _round_up(M, tile_m)
    if m_pad != M:
        x2d = jnp.pad(x2d, ((0, m_pad - M), (0, 0)))
    bias2 = bias.reshape(1, N)

    kernel = functools.partial(_matmul_bias_act_kernel, apply_gelu=apply_gelu)
    out = pl.pallas_call(
        kernel,
        out_shape=jax.ShapeDtypeStruct((m_pad, N), x2d.dtype),
        grid_spec=pltpu.PrefetchScalarGridSpec(
            num_scalar_prefetch=0,
            grid=(m_pad // tile_m,),
            in_specs=[
                pl.BlockSpec((tile_m, K), lambda i: (i, 0)),
                pl.BlockSpec((K, N), lambda i: (0, 0)),      # resident weights
                pl.BlockSpec((1, N), lambda i: (0, 0)),      # resident bias
            ],
            out_specs=pl.BlockSpec((tile_m, N), lambda i: (i, 0)),
        ),
        compiler_params=pltpu.CompilerParams(
            dimension_semantics=("parallel",)),
    )(x2d, w2d, bias2)
    return out[:M]


# ----------------------------------------------------------------------------
# InstanceNorm2d (affine) kernel over a (B*C, HW) row layout.
# ----------------------------------------------------------------------------
def _instance_norm_kernel(x_ref, g_ref, b_ref, o_ref, *, hw_true, eps):
    x = x_ref[...]                                # (TILE_R, HW_pad)
    hw_pad = x.shape[-1]
    inv_n = 1.0 / float(hw_true)

    if hw_pad != hw_true:                         # mask padded lanes out of stats
        mask = jax.lax.broadcasted_iota(jnp.int32, x.shape, 1) < hw_true
        xs = jnp.where(mask, x, 0.0)
    else:
        xs = x
    mean = jnp.sum(xs, axis=-1, keepdims=True) * inv_n       # (TILE_R, 1)
    centered = x - mean
    c2 = centered * centered
    if hw_pad != hw_true:
        c2 = jnp.where(mask, c2, 0.0)
    var = jnp.sum(c2, axis=-1, keepdims=True) * inv_n         # biased var

    # All mean/var-dependent math at (TILE_R, 1) width; per-element is mul+add.
    scale = g_ref[...] * jax.lax.rsqrt(var + eps)              # (TILE_R, 1)
    o_ref[...] = (centered * scale + b_ref[...]).astype(o_ref.dtype)


def _instance_norm_nchw(x, gamma, beta, *, eps=1e-5):
    B, C, H, W = x.shape
    HW = H * W
    rows = B * C
    hw_pad = _round_up(HW, 128)                   # lane-dense output

    # Row tile: multiple of 8, ~2 MiB per tile so double-buffered in+out tiles
    # stay inside v5e's 16 MiB default scoped VMEM (and well under v7x's 32).
    bytes_per_row = hw_pad * 4
    target_rows = min(1024, (2 * 1024 * 1024) // max(bytes_per_row, 1))
    tile_r = max(8, (target_rows // 8) * 8)
    tile_r = min(tile_r, _round_up(rows, 8))
    rows_pad = _round_up(rows, tile_r)

    x2 = x.reshape(rows, HW)
    if rows_pad != rows or hw_pad != HW:
        x2 = jnp.pad(x2, ((0, rows_pad - rows), (0, hw_pad - HW)))

    # Pre-tile affine params once in the wrapper to (B*C, 1).
    g2 = jnp.tile(gamma.reshape(1, C), (B, 1)).reshape(rows, 1)
    b2 = jnp.tile(beta.reshape(1, C), (B, 1)).reshape(rows, 1)
    if rows_pad != rows:
        g2 = jnp.pad(g2, ((0, rows_pad - rows), (0, 0)))
        b2 = jnp.pad(b2, ((0, rows_pad - rows), (0, 0)))

    kernel = functools.partial(_instance_norm_kernel, hw_true=HW, eps=eps)
    out = pl.pallas_call(
        kernel,
        out_shape=jax.ShapeDtypeStruct((rows_pad, hw_pad), x.dtype),
        grid_spec=pltpu.PrefetchScalarGridSpec(
            num_scalar_prefetch=0,
            grid=(rows_pad // tile_r,),
            in_specs=[
                pl.BlockSpec((tile_r, hw_pad), lambda i: (i, 0)),
                pl.BlockSpec((tile_r, 1), lambda i: (i, 0)),
                pl.BlockSpec((tile_r, 1), lambda i: (i, 0)),
            ],
            out_specs=pl.BlockSpec((tile_r, hw_pad), lambda i: (i, 0)),
        ),
        compiler_params=pltpu.CompilerParams(
            dimension_semantics=("parallel",)),
    )(x2, g2, b2)

    return out[:rows, :HW].reshape(B, C, H, W)


# ----------------------------------------------------------------------------
# Wrapper-side layout plumbing (im2col, weight reshapes, NCHW<->NHWC).
# ----------------------------------------------------------------------------
def _im2col_3x3(x_nhwc):
    B, H, W, C = x_nhwc.shape
    xp = jnp.pad(x_nhwc, ((0, 0), (1, 1), (1, 1), (0, 0)))
    cols = [xp[:, dy:dy + H, dx:dx + W, :] for dy in range(3) for dx in range(3)]
    return jnp.concatenate(cols, axis=-1).reshape(B * H * W, 9 * C)


def _w3x3_to_mat(w):     # (Cout, Cin, 3, 3) -> (9*Cin, Cout), rows = (dy*3+dx)*Cin + cin
    cout, cin = w.shape[0], w.shape[1]
    return jnp.transpose(w, (2, 3, 1, 0)).reshape(9 * cin, cout)


def _w1x1_to_mat(w):     # (Cout, Cin, 1, 1) -> (Cin, Cout)
    cout, cin = w.shape[0], w.shape[1]
    return jnp.transpose(w.reshape(cout, cin), (1, 0))


def scm_forward(x, params):
    """x: (B, 3, H, W) float32. Returns (B, out_plane, H, W)."""
    (w1, b1), (w2, b2), (w3, b3), (w4, b4), (gamma, beta) = params
    B, _, H, W = x.shape

    h = jnp.transpose(x, (0, 2, 3, 1))                         # NCHW -> NHWC

    # BasicConv(3 -> C/4, 3x3) + GELU
    h = _matmul_bias_act(_im2col_3x3(h), _w3x3_to_mat(w1), b1, apply_gelu=True)
    # BasicConv(C/4 -> C/2, 1x1) + GELU
    h = _matmul_bias_act(h, _w1x1_to_mat(w2), b2, apply_gelu=True)
    # BasicConv(C/2 -> C/2, 3x3) + GELU
    h = _matmul_bias_act(_im2col_3x3(h.reshape(B, H, W, -1)),
                         _w3x3_to_mat(w3), b3, apply_gelu=True)
    # BasicConv(C/2 -> C, 1x1), no activation
    h = _matmul_bias_act(h, _w1x1_to_mat(w4), b4, apply_gelu=False)

    C = w4.shape[0]
    h = jnp.transpose(h.reshape(B, H, W, C), (0, 3, 1, 2))     # NHWC -> NCHW
    return _instance_norm_nchw(h, gamma, beta, eps=1e-5)


# ----------------------------------------------------------------------------
# Pure-JAX reference (matches PyTorch SCM semantics).
# ----------------------------------------------------------------------------
def scm_reference(x, params):
    (w1, b1), (w2, b2), (w3, b3), (w4, b4), (gamma, beta) = params

    def conv(h, w, b):
        pad = w.shape[-1] // 2
        y = jax.lax.conv_general_dilated(
            h, w, window_strides=(1, 1),
            padding=[(pad, pad), (pad, pad)],
            dimension_numbers=("NCHW", "OIHW", "NCHW"),
            precision=jax.lax.Precision.HIGHEST)
        return y + b.reshape(1, -1, 1, 1)

    h = jax.nn.gelu(conv(x, w1, b1), approximate=False)
    h = jax.nn.gelu(conv(h, w2, b2), approximate=False)
    h = jax.nn.gelu(conv(h, w3, b3), approximate=False)
    h = conv(h, w4, b4)
    mean = jnp.mean(h, axis=(2, 3), keepdims=True)
    var = jnp.mean((h - mean) ** 2, axis=(2, 3), keepdims=True)
    return ((h - mean) * jax.lax.rsqrt(var + 1e-5) * gamma.reshape(1, -1, 1, 1)
            + beta.reshape(1, -1, 1, 1))


if __name__ == "__main__":
    key = jax.random.PRNGKey(0)
    B, H, W = 2, 16, 16
    out_plane = 32
    c1, c2, c3, c4 = out_plane // 4, out_plane // 2, out_plane // 2, out_plane

    ks = jax.random.split(key, 11)
    x = jax.random.normal(ks[0], (B, 3, H, W), dtype=jnp.float32)

    def conv_params(kw, kb, cout, cin, ksz):
        scale = 1.0 / float((cin * ksz * ksz) ** 0.5)
        w = scale * jax.random.normal(kw, (cout, cin, ksz, ksz), dtype=jnp.float32)
        b = 0.1 * jax.random.normal(kb, (cout,), dtype=jnp.float32)
        return w, b

    p1 = conv_params(ks[1], ks[2], c1, 3, 3)
    p2 = conv_params(ks[3], ks[4], c2, c1, 1)
    p3 = conv_params(ks[5], ks[6], c3, c2, 3)
    p4 = conv_params(ks[7], ks[8], c4, c3, 1)
    # InstanceNorm2d affine params (use non-trivial values to exercise the path).
    gamma = 1.0 + 0.1 * jax.random.normal(ks[9], (c4,), dtype=jnp.float32)
    beta = 0.1 * jax.random.normal(ks[10], (c4,), dtype=jnp.float32)

    params = (p1, p2, p3, p4, (gamma, beta))

    y = scm_forward(x, params)
    y = jax.block_until_ready(y)

    y_ref = scm_reference(x, params)
    assert y.shape == (B, out_plane, H, W)
    max_err = jnp.max(jnp.abs(y - y_ref))
    assert jnp.allclose(y, y_ref, atol=1e-3, rtol=1e-3), (
        f"mismatch vs reference, max abs err {max_err}")

    print("KERNEL_OK")
</pallas_src>

<mosaic_0001>
module attributes {stable_mosaic.version = 11 : i64} {
  func.func @_matmul_bias_act_kernel(%arg0: i32, %arg1: memref<256x27xf32, #tpu.memory_space<vmem>>, %arg2: memref<27x8xf32, #tpu.memory_space<vmem>>, %arg3: memref<1x8xf32, #tpu.memory_space<vmem>>, %arg4: memref<256x8xf32, #tpu.memory_space<vmem>>) attributes {dimension_semantics = [#tpu.dimension_semantics<parallel>], iteration_bounds = array<i64: 2>, scalar_prefetch = 0 : i64, scratch_operands = 0 : i64, tpu.core_type = #tpu.core_type<tc>, window_params = [{transform_indices = @transform_0, window_bounds = array<i64: 256, 27>}, {pipeline_mode = #tpu.pipeline_mode<synchronous>, transform_indices = @transform_1, window_bounds = array<i64: 27, 8>}, {pipeline_mode = #tpu.pipeline_mode<synchronous>, transform_indices = @transform_2, window_bounds = array<i64: 1, 8>}, {transform_indices = @transform_3, window_bounds = array<i64: 256, 8>}]} {
    %c0 = arith.constant 0 : index
    %c0_0 = arith.constant 0 : index
    %0 = vector.load %arg1[%c0, %c0_0] : memref<256x27xf32, #tpu.memory_space<vmem>>, vector<256x27xf32>
    %c0_1 = arith.constant 0 : index
    %c0_2 = arith.constant 0 : index
    %1 = vector.load %arg2[%c0_1, %c0_2] : memref<27x8xf32, #tpu.memory_space<vmem>>, vector<27x8xf32>
    %cst = arith.constant dense<0.000000e+00> : vector<256x8xf32>
    %2 = tpu.matmul %0, %1, %cst {dimension_numbers = #tpu.dot_dimension_numbers<[1], [0], [0], [1], [0, 0, 1, 1], [], []>} : vector<256x27xf32>, vector<27x8xf32>, vector<256x8xf32> -> vector<256x8xf32>
    %c0_3 = arith.constant 0 : index
    %c0_4 = arith.constant 0 : index
    %3 = vector.load %arg3[%c0_3, %c0_4] : memref<1x8xf32, #tpu.memory_space<vmem>>, vector<1x8xf32>
    %4 = vector.broadcast %3 : vector<1x8xf32> to vector<256x8xf32>
    %5 = arith.addf %2, %4 : vector<256x8xf32>
    %cst_5 = arith.constant 5.000000e-01 : f32
    %6 = vector.broadcast %cst_5 : f32 to vector<256x8xf32>
    %7 = arith.mulf %6, %5 : vector<256x8xf32>
    %cst_6 = arith.constant 0.707106769 : f32
    %8 = vector.broadcast %cst_6 : f32 to vector<256x8xf32>
    %9 = arith.mulf %5, %8 : vector<256x8xf32>
    %10 = math.absf %9 : vector<256x8xf32>
    %cst_7 = arith.constant 0.327591091 : f32
    %11 = vector.broadcast %cst_7 : f32 to vector<256x8xf32>
    %12 = arith.mulf %11, %10 : vector<256x8xf32>
    %cst_8 = arith.constant 1.000000e+00 : f32
    %13 = vector.broadcast %cst_8 : f32 to vector<256x8xf32>
    %14 = arith.addf %13, %12 : vector<256x8xf32>
    %cst_9 = arith.constant 1.000000e+00 : f32
    %15 = vector.broadcast %cst_9 : f32 to vector<256x8xf32>
    %16 = arith.divf %15, %14 : vector<256x8xf32>
    %cst_10 = arith.constant 1.06140542 : f32
    %17 = vector.broadcast %cst_10 : f32 to vector<256x8xf32>
    %18 = arith.mulf %16, %17 : vector<256x8xf32>
    %cst_11 = arith.constant -1.45315206 : f32
    %19 = vector.broadcast %cst_11 : f32 to vector<256x8xf32>
    %20 = arith.addf %19, %18 : vector<256x8xf32>
    %21 = arith.mulf %16, %20 : vector<256x8xf32>
    %cst_12 = arith.constant 1.42141378 : f32
    %22 = vector.broadcast %cst_12 : f32 to vector<256x8xf32>
    %23 = arith.addf %22, %21 : vector<256x8xf32>
    %24 = arith.mulf %16, %23 : vector<256x8xf32>
    %cst_13 = arith.constant -0.284496725 : f32
    %25 = vector.broadcast %cst_13 : f32 to vector<256x8xf32>
    %26 = arith.addf %25, %24 : vector<256x8xf32>
    %27 = arith.mulf %16, %26 : vector<256x8xf32>
    %cst_14 = arith.constant 0.254829586 : f32
    %28 = vector.broadcast %cst_14 : f32 to vector<256x8xf32>
    %29 = arith.addf %28, %27 : vector<256x8xf32>
    %30 = arith.mulf %16, %29 : vector<256x8xf32>
    %cst_15 = arith.constant 0.000000e+00 : f32
    %31 = vector.broadcast %cst_15 : f32 to vector<256x8xf32>
    %32 = arith.subf %31, %10 : vector<256x8xf32>
    %33 = arith.mulf %32, %10 : vector<256x8xf32>
    %34 = math.exp %33 : vector<256x8xf32>
    %35 = arith.mulf %30, %34 : vector<256x8xf32>
    %cst_16 = arith.constant 1.000000e+00 : f32
    %36 = vector.broadcast %cst_16 : f32 to vector<256x8xf32>
    %37 = arith.subf %36, %35 : vector<256x8xf32>
    %cst_17 = arith.constant 0.000000e+00 : f32
    %38 = vector.broadcast %cst_17 : f32 to vector<256x8xf32>
    %39 = arith.cmpf olt, %9, %38 : vector<256x8xf32>
    %cst_18 = arith.constant 0.000000e+00 : f32
    %40 = vector.broadcast %cst_18 : f32 to vector<256x8xf32>
    %41 = arith.subf %40, %37 : vector<256x8xf32>
    %42 = arith.select %39, %41, %37 : vector<256x8xi1>, vector<256x8xf32>
    %cst_19 = arith.constant 1.000000e+00 : f32
    %43 = vector.broadcast %cst_19 : f32 to vector<256x8xf32>
    %44 = arith.addf %43, %42 : vector<256x8xf32>
    %45 = arith.mulf %7, %44 : vector<256x8xf32>
    %c0_20 = arith.constant 0 : index
    %c0_21 = arith.constant 0 : index
    %46 = vector.load %arg4[%c0_20, %c0_21] : memref<256x8xf32, #tpu.memory_space<vmem>>, vector<256x8xf32>
    tpu.vector_store %arg4[%c0_20, %c0_21], %45 {strides = array<i32>} : memref<256x8xf32, #tpu.memory_space<vmem>>, vector<256x8xf32>,
    return
  }
  func.func @transform_0(%arg0: i32) -> (i32, i32) {
    %c0_i32 = arith.constant 0 : i32
    %c0_i32_0 = arith.constant 0 : i32
    return %arg0, %c0_i32 : i32, i32
  }
  func.func @transform_1(%arg0: i32) -> (i32, i32) {
    %c0_i32 = arith.constant 0 : i32
    %c0_i32_0 = arith.constant 0 : i32
    %c0_i32_1 = arith.constant 0 : i32
    return %c0_i32, %c0_i32_0 : i32, i32
  }
  func.func @transform_2(%arg0: i32) -> (i32, i32) {
    %c0_i32 = arith.constant 0 : i32
    %c0_i32_0 = arith.constant 0 : i32
    %c0_i32_1 = arith.constant 0 : i32
    return %c0_i32, %c0_i32_0 : i32, i32
  }
  func.func @transform_3(%arg0: i32) -> (i32, i32) {
    %c0_i32 = arith.constant 0 : i32
    %c0_i32_0 = arith.constant 0 : i32
    return %arg0, %c0_i32 : i32, i32
  }
}

</mosaic_0001>

<bundles_post_ra>
// kernel: tpu_custom_call.1
= control target key start
LH: loop header
LB: loop body
LE: loop exit
PB: predicated region body
PF: predicated region fallthrough
CT: control target
= control target key end

     0   :  { %s1806_s12 = smov 0   ;;  %s2603_s0 = inlined_call_operand.vmem [shape: f32[512,27], index: 0, kind: input, shape index: {}]   ;;  %s2604_s1 = inlined_call_operand.vmem [shape: f32[27,8], index: 1, kind: input, shape index: {}]   ;;  %s2605_s2 = inlined_call_operand.vmem [shape: f32[1,8], index: 2, kind: input, shape index: {}]   ;;  %s2606_s3 = inlined_call_operand.vmem [shape: f32[512,8], index: 3, kind: output, shape index: {}]  }
   0x1 LB: > { %s1496_s13 = sadd.s32 4294967295, %s1784_s12   ;;  %p1500_p0 = scmp.ge.s32.totalorder %s1784_s12, 1  ;;  %s1784_s12 = sphi %s1806_s12, %s13_s12  }
   0x2   : > { %p138_p1 = scmp.lt.s32.totalorder %s1784_s12, 3 }
   0x4   : > { %p139_p2 = pnand %p1500_p0, %p138_p1 }
   0x5   : > { %s1501_s18 = sshll.u32 (!%p139_p2), %s1496_s13, 5 }
   0x6   : > { %142 = sbr.rel (%p139_p2) target bundleno = 460 (0x1cc), region = 32  ;;  %p163_p3 = scmp.lt.s32.totalorder (!%p139_p2), %s1501_s18, 63 }
   0xb   : > { %v209_v0 = vld [vmem:[%s2604_s1 + $0x18] sm:$0x7]  ;;  %vm314_vm0 = vcmask 1042432   ;;  %v208_v1 = vld [vmem:[%s2604_s1 + $0x10] sm:$0xff]  ;;  %v207_v2 = vld [vmem:[%s2604_s1 + $0x8] sm:$0xff]  ;;  %s2608_s18 = smov (!%p163_p3, %s1501_s18), 63 }
   0xc   : > { %1577 = vmatprep.subr.msk.mxu0 %vm314_vm0, %v209_v0  ;;  %1633 = vmatprep.subr.msk.mxu1 %vm314_vm0, %v209_v0  ;;  %v206_v3 = vld [vmem:[%s2604_s1] sm:$0xff]  ;;  %s1502_s23 = sshll.u32 %s2608_s18, 3  ;;  %vm217_vm1 = vcmask 220160   ;;  %vm1407_vm4 = vcmask 64512  }
   0xd   : > { %1578 = vmatpush3.msk.msra.mxu0 %vm314_vm0, %v209_v0  ;;  %1637 = vmatpush3.msk.msra.mxu1 %vm314_vm0, %v209_v0  ;;  %s1834_s26 = scalar_lea.vmem %s2603_s0, %s1502_s23  ;;  %v1903_v36 = vld [vmem:[%s2605_s2] ss:$0 sm:$0xff]  ;;  %s2075_s4 = scalar_lea.vmem %s2606_s3, %s1502_s23 }
   0xe   : > { %1579 = vmatprep.subr.mxu0 %v208_v1  ;;  %1634 = vmatprep.subr.mxu1 %v208_v1  ;;  %v174_v4 = vld [vmem:[%s1834_s26] sm:$0xff]  ;;  %v175_v6 = vld [vmem:[%s1834_s26 + $0x8] sm:$0xff]  ;;  %v176_v8 = vld [vmem:[%s1834_s26 + $0x10] sm:$0xff] }
   0xf   : > { %1580 = vmatpush3.msra.mxu0 %v208_v1  ;;  %1638 = vmatpush3.msra.mxu1 %v208_v1  ;;  %v190_v5 = vld [vmem:[%s1834_s26 + $0x80] sm:$0xff]  ;;  %v191_v7 = vld [vmem:[%s1834_s26 + $0x88] sm:$0xff]  ;;  %v192_v9 = vld [vmem:[%s1834_s26 + $0x90] sm:$0xff] }
  0x10   : > { %1581 = vmatprep.subr.mxu0 %v207_v2  ;;  %1635 = vmatprep.subr.mxu1 %v207_v2  ;;  %v177_v10 = vld [vmem:[%s1834_s26 + $0x18] sm:$0xff]  ;;  %v178_v12 = vld [vmem:[%s1834_s26 + $0x20] sm:$0xff]  ;;  %v179_v14 = vld [vmem:[%s1834_s26 + $0x28] sm:$0xff] }
  0x11   : > { %1582 = vmatpush3.msra.mxu0 %v207_v2  ;;  %1639 = vmatpush3.msra.mxu1 %v207_v2  ;;  %v193_v11 = vld [vmem:[%s1834_s26 + $0x98] sm:$0xff]  ;;  %v194_v13 = vld [vmem:[%s1834_s26 + $0xa0] sm:$0xff]  ;;  %v195_v15 = vld [vmem:[%s1834_s26 + $0xa8] sm:$0xff] }
  0x12   : > { %1583 = vmatprep.subr.mxu0 %v206_v3  ;;  %1636 = vmatprep.subr.mxu1 %v206_v3  ;;  %v180_v16 = vld [vmem:[%s1834_s26 + $0x30] sm:$0xff]  ;;  %v181_v18 = vld [vmem:[%s1834_s26 + $0x38] sm:$0xff]  ;;  %v182_v20 = vld [vmem:[%s1834_s26 + $0x40] sm:$0xff] }
  0x13   : > { %1584 = vmatpush3.msra.mxu0 %v206_v3  ;;  %1640 = vmatpush3.msra.mxu1 %v206_v3  ;;  %v196_v17 = vld [vmem:[%s1834_s26 + $0xb0] sm:$0xff]  ;;  %v197_v19 = vld [vmem:[%s1834_s26 + $0xb8] sm:$0xff]  ;;  %v198_v21 = vld [vmem:[%s1834_s26 + $0xc0] sm:$0xff] }
  0x14   : > { %1585 = vmatprep.mubr.msk.f32.mxu0 %vm217_vm1, %v174_v4  ;;  %1609 = vmatprep.mubr.msk.f32.mxu1 %vm217_vm1, %v190_v5  ;;  %v183_v22 = vld [vmem:[%s1834_s26 + $0x48] sm:$0xff]  ;;  %v184_v24 = vld [vmem:[%s1834_s26 + $0x50] sm:$0xff]  ;;  %v185_v26 = vld [vmem:[%s1834_s26 + $0x58] sm:$0xff] }
  0x15   : > { %1586 = vmatmul.mubr.msk.f32.vlgmr.msra.gmra.mxu0 %vm217_vm1, %v175_v6  ;;  %1610 = vmatmul.mubr.msk.f32.vlgmr.msra.gmra.mxu1 %vm217_vm1, %v191_v7  ;;  %v199_v23 = vld [vmem:[%s1834_s26 + $0xc8] sm:$0xff]  ;;  %v200_v25 = vld [vmem:[%s1834_s26 + $0xd0] sm:$0xff]  ;;  %v201_v27 = vld [vmem:[%s1834_s26 + $0xd8] sm:$0xff] }
  0x16   : > { %1588 = vmatprep.mubr.msk.f32.mxu0 %vm217_vm1, %v176_v8  ;;  %1612 = vmatprep.mubr.msk.f32.mxu1 %vm217_vm1, %v192_v9  ;;  %v186_v28 = vld [vmem:[%s1834_s26 + $0x60] sm:$0xff]  ;;  %v187_v30 = vld [vmem:[%s1834_s26 + $0x68] sm:$0xff]  ;;  %v188_v32 = vld [vmem:[%s1834_s26 + $0x70] sm:$0xff] }
  0x17   : > { %v202_v29 = vld [vmem:[%s1834_s26 + $0xe0] sm:$0xff]  ;;  %v203_v31 = vld [vmem:[%s1834_s26 + $0xe8] sm:$0xff]  ;;  %v204_v33 = vld [vmem:[%s1834_s26 + $0xf0] sm:$0xff] }
  0x18   : > { %v189_v34 = vld [vmem:[%s1834_s26 + $0x78] sm:$0xff] }
  0x19   : > { %1589 = vmatmul.mubr.msk.f32.gmra.mxu0 %vm217_vm1, %v177_v10  ;;  %1613 = vmatmul.mubr.msk.f32.gmra.mxu1 %vm217_vm1, %v193_v11  ;;  %v205_v35 = vld [vmem:[%s1834_s26 + $0xf8] sm:$0xff] }
  0x1a   : > { %1591 = vmatprep.mubr.msk.f32.mxu0 %vm217_vm1, %v178_v12  ;;  %1615 = vmatprep.mubr.msk.f32.mxu1 %vm217_vm1, %v194_v13 }
  0x1d   : > { %1592 = vmatmul.mubr.msk.f32.gmra.mxu0 %vm217_vm1, %v179_v14  ;;  %1616 = vmatmul.mubr.msk.f32.gmra.mxu1 %vm217_vm1, %v195_v15 }
  0x1e   : > { %1594 = vmatprep.mubr.msk.f32.mxu0 %vm217_vm1, %v180_v16  ;;  %1618 = vmatprep.mubr.msk.f32.mxu1 %vm217_vm1, %v196_v17 }
  0x21   : > { %1595 = vmatmul.mubr.msk.f32.gmra.mxu0 %vm217_vm1, %v181_v18  ;;  %1619 = vmatmul.mubr.msk.f32.gmra.mxu1 %vm217_vm1, %v197_v19 }
  0x22   : > { %1597 = vmatprep.mubr.msk.f32.mxu0 %vm217_vm1, %v182_v20  ;;  %1621 = vmatprep.mubr.msk.f32.mxu1 %vm217_vm1, %v198_v21 }
  0x25   : > { %1598 = vmatmul.mubr.msk.f32.gmra.mxu0 %vm217_vm1, %v183_v22  ;;  %1622 = vmatmul.mubr.msk.f32.gmra.mxu1 %vm217_vm1, %v199_v23 }
  0x26   : > { %1600 = vmatprep.mubr.msk.f32.mxu0 %vm217_vm1, %v184_v24  ;;  %1624 = vmatprep.mubr.msk.f32.mxu1 %vm217_vm1, %v200_v25 }
  0x29   : > { %1601 = vmatmul.mubr.msk.f32.gmra.mxu0 %vm217_vm1, %v185_v26  ;;  %1625 = vmatmul.mubr.msk.f32.gmra.mxu1 %vm217_vm1, %v201_v27 }
  0x2a   : > { %1603 = vmatprep.mubr.msk.f32.mxu0 %vm217_vm1, %v186_v28  ;;  %1627 = vmatprep.mubr.msk.f32.mxu1 %vm217_vm1, %v202_v29 }
  0x2d   : > { %1604 = vmatmul.mubr.msk.f32.gmra.mxu0 %vm217_vm1, %v187_v30  ;;  %1628 = vmatmul.mubr.msk.f32.gmra.mxu1 %vm217_vm1, %v203_v31 }
  0x2e   : > { %1606 = vmatprep.mubr.msk.f32.mxu0 %vm217_vm1, %v188_v32  ;;  %1630 = vmatprep.mubr.msk.f32.mxu1 %vm217_vm1, %v204_v33 }
  0x31   : > { %1607 = vmatmul.mubr.msk.f32.gmra.mxu0 %vm217_vm1, %v189_v34  ;;  %1631 = vmatmul.mubr.msk.f32.gmra.mxu1 %vm217_vm1, %v205_v35 }
  0xd5   : > { %v1587_v37 = vpop.f32.mrf.mxu0  ;;  %v1611_v38 = vpop.f32.mrf.mxu1 }
  0xd6   : > { %v390_v39 = vadd.f32 %v1587_v37, %v1903_v36  ;;  %v470_v40 = vadd.f32 %v1611_v38, %v1903_v36 }
  0xd7   : > { %v384_v41 = vpop.f32.mrf.mxu0  ;;  %v464_v42 = vpop.f32.mrf.mxu1 }
  0xd8   : > { %v1907_v43 = vmul.f32 0.70710677, %v390_v39  ;;  %v1909_v44 = vmul.f32 0.70710677, %v470_v40  ;;  %v1912_v45 = vadd.f32 %v1903_v36, %v384_v41  ;;  %v1915_v46 = vadd.f32 %v1903_v36, %v464_v42 }
  0xd9   : > { %v1590_v55 = vpop.f32.mrf.mxu0  ;;  %v1614_v3 = vpop.f32.mrf.mxu1  ;;  %v1940_v16 = vmul.f32 0.5, %v390_v39  ;;  %v1956_v32 = vmul.f32 0.5, %v470_v40 }
  0xda   : > { %v608_v47 = vand.u32 2147483647, %v1907_v43  ;;  %v624_v48 = vand.u32 2147483647, %v1909_v44  ;;  %v1920_v49 = vmul.f32 0.70710677, %v1912_v45  ;;  %v1928_v2 = vadd.f32 %v1590_v55, %v1903_v36 }
  0xdb   : > { %v1923_v50 = vmul.f32 0.70710677, %v1915_v46  ;;  %v394_v4 = vpop.f32.mrf.mxu0  ;;  %v1934_v11 = vadd.f32 %v1614_v3, %v1903_v36  ;;  %v474_v15 = vpop.f32.mrf.mxu1  ;;  %vm1248_vm2 = vcmp.lt.f32.partialorder %v1907_v43, 0.0  ;;  %vm1264_vm3 = vcmp.lt.f32.partialorder %v1909_v44, 0.0 }
  0xdc   : > { %v640_v51 = vmul.f32 0.3275911, %v608_v47  ;;  %v1056_v52 = vsub.f32 0.0, %v608_v47  ;;  %v656_v53 = vmul.f32 0.3275911, %v624_v48  ;;  %v1072_v54 = vsub.f32 0.0, %v624_v48 }
  0xdd   : > { %v607_v56 = vand.u32 2147483647, %v1920_v49  ;;  %v623_v57 = vand.u32 2147483647, %v1923_v50  ;;  %v1931_v8 = vmul.f32 0.70710677, %v1928_v2  ;;  %v1937_v12 = vadd.f32 %v1903_v36, %v394_v4  ;;  %v1593_v31 = vpop.f32.mrf.mxu0 }
  0xde   : > { %v672_v58 = vadd.f32 1.0, %v640_v51  ;;  %v1088_v59 = vmul.f32 %v1056_v52, %v608_v47  ;;  %v688_v60 = vadd.f32 1.0, %v656_v53  ;;  %v1104_v1 = vmul.f32 %v1072_v54, %v624_v48  ;;  %v1617_v53 = vpop.f32.mrf.mxu1 }
  0xdf   : > { %v639_v61 = vmul.f32 0.3275911, %v607_v56  ;;  %v1055_v62 = vsub.f32 0.0, %v607_v56  ;;  %v655_v63 = vmul.f32 0.3275911, %v623_v57  ;;  %v1071_v0 = vsub.f32 0.0, %v623_v57  ;;  %v404_v4 = vpop.f32.mrf.mxu0 }
  0xe0   : > { %1649 = vrcp.f32 %v672_v58  ;;  %v1121_v9 = vmul.f32 1.442695, %v1088_v59  ;;  %v1153_v13 = vmul.f32 1.442695, %v1104_v1  ;;  %v610_v14 = vand.u32 2147483647, %v1931_v8 }
  0xe1   : > { %1651 = vrcp.f32 %v688_v60  ;;  %v671_v5 = vadd.f32 1.0, %v639_v61  ;;  %v1087_v6 = vmul.f32 %v1055_v62, %v607_v56  ;;  %v687_v7 = vadd.f32 1.0, %v655_v63 }
  0xe2   : > { %v1103_v10 = vmul.f32 %v1071_v0, %v623_v57  ;;  %v1943_v18 = vmul.f32 0.70710677, %v1934_v11  ;;  %v642_v19 = vmul.f32 0.3275911, %v610_v14  ;;  %v1058_v20 = vsub.f32 0.0, %v610_v14 }
  0xe3   : > { %1653 = vrcp.f32 %v671_v5  ;;  %v1119_v17 = vmul.f32 1.442695, %v1087_v6  ;;  %v1946_v21 = vmul.f32 0.70710677, %v1937_v12  ;;  %v1950_v24 = vadd.f32 %v1903_v36, %v474_v15 }
  0xe4   : > { %1655 = vrcp.f32 %v687_v7  ;;  %v1151_v22 = vmul.f32 1.442695, %v1103_v10  ;;  %v626_v23 = vand.u32 2147483647, %v1943_v18  ;;  %v674_v25 = vadd.f32 1.0, %v642_v19 }
  0xe5   : > { %1657 = vpow2.f32 %v1121_v9  ;;  %v1090_v26 = vmul.f32 %v1058_v20, %v610_v14  ;;  %v609_v27 = vand.u32 2147483647, %v1946_v21  ;;  %v1954_v30 = vmul.f32 0.70710677, %v1950_v24 }
  0xe6   : > { %1659 = vpow2.f32 %v1153_v13  ;;  %v658_v28 = vmul.f32 0.3275911, %v626_v23  ;;  %v1074_v29 = vsub.f32 0.0, %v626_v23  ;;  %v1960_v47 = vadd.f32 %v1593_v31, %v1903_v36 }
  0xe7   : > { %1661 = vpow2.f32 %v1119_v17  ;;  %v641_v33 = vmul.f32 0.3275911, %v609_v27  ;;  %v1057_v34 = vsub.f32 0.0, %v609_v27  ;;  %v625_v38 = vand.u32 2147483647, %v1954_v30 }
  0xe8   : > { %1663 = vrcp.f32 %v674_v25  ;;  %v690_v35 = vadd.f32 1.0, %v658_v28  ;;  %v1106_v37 = vmul.f32 %v1074_v29, %v626_v23  ;;  %v1125_v39 = vmul.f32 1.442695, %v1090_v26 }
  0xe9   : > { %1665 = vpow2.f32 %v1151_v22  ;;  %v673_v41 = vadd.f32 1.0, %v641_v33  ;;  %v1089_v42 = vmul.f32 %v1057_v34, %v609_v27  ;;  %v1965_v51 = vmul.f32 0.5, %v1912_v45  ;;  %v484_v22 = vpop.f32.mrf.mxu1 }
  0xea   : > { %1667 = vrcp.f32 %v690_v35  ;;  %v657_v40 = vmul.f32 0.3275911, %v625_v38  ;;  %v1073_v52 = vsub.f32 0.0, %v625_v38  ;;  %v1971_v56 = vmul.f32 0.5, %v1915_v46 }
  0xeb   : > { %v1157_v57 = vmul.f32 1.442695, %v1106_v37  ;;  %1669 = vrcp.f32 %v673_v41  ;;  %v1123_v59 = vmul.f32 1.442695, %v1089_v42  ;;  %v1975_v62 = vmul.f32 0.70710677, %v1960_v47 }
  0xec   : > { %v689_v60 = vadd.f32 1.0, %v657_v40  ;;  %v1105_v61 = vmul.f32 %v1073_v52, %v625_v38  ;;  %1671 = vpow2.f32 %v1125_v39  ;;  %v1978_v63 = vadd.f32 %v1617_v53, %v1903_v36 }
  0xed   : > { %v1962_v48 = vpop.eup %1649  ;;  %v1983_v46 = vmul.f32 0.5, %v1928_v2  ;;  %v612_v7 = vand.u32 2147483647, %v1975_v62  ;;  %v1992_v13 = vmul.f32 0.5, %v1934_v11  ;;  %v1999_v20 = vadd.f32 %v1903_v36, %v404_v4 }
  0xee   : > { %v1967_v54 = vpop.eup %1651  ;;  %v768_v55 = vmul.f32 1.0614054, %v1962_v48  ;;  %1673 = vrcp.f32 %v689_v60  ;;  %v1155_v3 = vmul.f32 1.442695, %v1105_v61  ;;  %v1995_v2 = vmul.f32 0.70710677, %v1978_v63 }
  0xef   : > { %v784_v58 = vmul.f32 1.0614054, %v1967_v54  ;;  %1675 = vpow2.f32 %v1157_v57  ;;  %v644_v26 = vmul.f32 0.3275911, %v612_v7  ;;  %v1060_v27 = vsub.f32 0.0, %v612_v7 }
  0xf0   : > { %v800_v45 = vadd.f32 -1.4531521, %v768_v55  ;;  %v1980_v0 = vpop.eup %1653  ;;  %1677 = vpow2.f32 %v1123_v59  ;;  %v2006_v33 = vand.u32 2147483647, %v1995_v2  ;;  %v2012_v39 = vadd.f32 %v1903_v36, %v484_v22 }
  0xf1   : > { %v816_v1 = vadd.f32 -1.4531521, %v784_v58  ;;  %v767_v6 = vmul.f32 1.0614054, %v1980_v0  ;;  %v1988_v9 = vpop.eup %1655  ;;  %1679 = vpow2.f32 %v1155_v3  ;;  %v676_v37 = vadd.f32 1.0, %v644_v26 }
  0xf2   : > { %v832_v5 = vmul.f32 %v1962_v48, %v800_v45  ;;  %v1658_v14 = vpop.eup %1657  ;;  %v783_v19 = vmul.f32 1.0614054, %v1988_v9  ;;  %v1092_v38 = vmul.f32 %v1060_v27, %v612_v7  ;;  %v660_v58 = vmul.f32 0.3275911, %v2006_v33 }
  0xf3   : > { %v848_v10 = vmul.f32 %v1967_v54, %v816_v1  ;;  %v799_v17 = vadd.f32 -1.4531521, %v767_v6  ;;  %v1660_v23 = vpop.eup %1659  ;;  %1681 = vrcp.f32 %v676_v37  ;;  %vm1247_vm5 = vcmp.lt.f32.partialorder %v1920_v49, 0.0 }
  0xf4   : > { %v864_v15 = vadd.f32 1.4214138, %v832_v5  ;;  %v2001_v11 = vpop.eup %1661  ;;  %v815_v31 = vadd.f32 -1.4531521, %v783_v19  ;;  %v1129_v57 = vmul.f32 1.442695, %v1092_v38 }
  0xf5   : > { %v880_v25 = vadd.f32 1.4214138, %v848_v10  ;;  %v831_v29 = vmul.f32 %v1980_v0, %v799_v17  ;;  %v2008_v34 = vpop.eup %1663  ;;  %v692_v6 = vadd.f32 1.0, %v660_v58  ;;  %vm1263_vm6 = vcmp.lt.f32.partialorder %v1923_v50, 0.0 }
  0xf6   : > { %v896_v28 = vmul.f32 %v1962_v48, %v864_v15  ;;  %v2014_v41 = vpop.eup %1665  ;;  %v847_v52 = vmul.f32 %v1988_v9, %v815_v31  ;;  %v770_v53 = vmul.f32 1.0614054, %v2008_v34  ;;  %1683 = vpow2.f32 %v1129_v57 }
  0xf7   : > { %v912_v35 = vmul.f32 %v1967_v54, %v880_v25  ;;  %v863_v40 = vadd.f32 1.4214138, %v831_v29  ;;  %v2019_v59 = vpop.eup %1667  ;;  %1685 = vrcp.f32 %v692_v6  ;;  %vm1250_vm7 = vcmp.lt.f32.partialorder %v1931_v8, 0.0 }
  0xf8   : > { %v928_v42 = vadd.f32 -0.28449672, %v896_v28  ;;  %v879_v45 = vadd.f32 1.4214138, %v847_v52  ;;  %v802_v1 = vadd.f32 -1.4531521, %v770_v53  ;;  %v2023_v3 = vpop.eup %1669 }
  0xf9   : > { %v944_v55 = vadd.f32 -0.28449672, %v912_v35  ;;  %v895_v61 = vmul.f32 %v1980_v0, %v863_v40  ;;  %v786_v5 = vmul.f32 1.0614054, %v2019_v59  ;;  %v2029_v19 = vpop.eup %1671  ;;  %v769_v26 = vmul.f32 1.0614054, %v2023_v3 }
  0xfa   : > { %v960_v60 = vmul.f32 %v1962_v48, %v928_v42  ;;  %v911_v15 = vmul.f32 %v1988_v9, %v879_v45  ;;  %v834_v17 = vmul.f32 %v2008_v34, %v802_v1  ;;  %vm1266_vm8 = vcmp.lt.f32.partialorder %v1943_v18, 0.0 }
  0xfb   : > { %v976_v4 = vmul.f32 %v1967_v54, %v944_v55  ;;  %v927_v10 = vadd.f32 -0.28449672, %v895_v61  ;;  %v818_v25 = vadd.f32 -1.4531521, %v786_v5  ;;  %v2033_v27 = vpop.eup %1673  ;;  %v801_v40 = vadd.f32 -1.4531521, %v769_v26 }
  0xfc   : > { %v992_v7 = vadd.f32 0.2548296, %v960_v60  ;;  %v943_v31 = vadd.f32 -0.28449672, %v911_v15  ;;  %v866_v35 = vadd.f32 1.4214138, %v834_v17  ;;  %v2038_v37 = vpop.eup %1675 }
  0xfd   : > { %v1008_v22 = vadd.f32 0.2548296, %v976_v4  ;;  %v959_v29 = vmul.f32 %v1980_v0, %v927_v10  ;;  %v850_v42 = vmul.f32 %v2019_v59, %v818_v25  ;;  %v785_v52 = vmul.f32 1.0614054, %v2033_v27  ;;  %v2043_v53 = vpop.eup %1677 }
  0xfe   : > { %v1024_v28 = vmul.f32 %v1962_v48, %v992_v7  ;;  %v975_v57 = vmul.f32 %v1988_v9, %v943_v31  ;;  %v898_v58 = vmul.f32 %v2008_v34, %v866_v35  ;;  %v2049_v1 = vpop.eup %1679  ;;  %vm1249_vm9 = vcmp.lt.f32.partialorder %v1946_v21, 0.0 }
  0xff   : > { %v1040_v38 = vmul.f32 %v1967_v54, %v1008_v22  ;;  %v991_v48 = vadd.f32 0.2548296, %v959_v29  ;;  %v882_v61 = vadd.f32 1.4214138, %v850_v42  ;;  %v833_v54 = vmul.f32 %v2023_v3, %v801_v40 }
 0x100   : > { %v1184_v55 = vmul.f32 %v1658_v14, %v1024_v28  ;;  %v817_v45 = vadd.f32 -1.4531521, %v785_v52  ;;  %v1007_v6 = vadd.f32 0.2548296, %v975_v57  ;;  %v930_v14 = vadd.f32 -0.28449672, %v898_v58  ;;  %v2059_v35 = vpop.eup %1681 }
 0x101   : > { %v1200_v60 = vmul.f32 %v1660_v23, %v1040_v38  ;;  %v1023_v5 = vmul.f32 %v1980_v0, %v991_v48  ;;  %v914_v10 = vmul.f32 %v2019_v59, %v882_v61  ;;  %v865_v15 = vadd.f32 1.4214138, %v833_v54 }
 0x102   : > { %v1216_v4 = vsub.f32 1.0, %v1184_v55  ;;  %v849_v23 = vmul.f32 %v2033_v27, %v817_v45  ;;  %v1039_v25 = vmul.f32 %v1988_v9, %v1007_v6  ;;  %v962_v26 = vmul.f32 %v2008_v34, %v930_v14 }
 0x103   : > { %v1232_v7 = vsub.f32 1.0, %v1200_v60  ;;  %v1183_v22 = vmul.f32 %v2001_v11, %v1023_v5  ;;  %v946_v0 = vadd.f32 -0.28449672, %v914_v10  ;;  %v897_v29 = vmul.f32 %v2023_v3, %v865_v15  ;;  %v2068_v57 = vpop.eup %1683 }
 0x104   : > { %v1280_v17 = vsub.f32 0.0, %v1216_v4  ;;  %v881_v31 = vadd.f32 1.4214138, %v849_v23  ;;  %v1199_v40 = vmul.f32 %v2014_v41, %v1039_v25  ;;  %v994_v52 = vadd.f32 0.2548296, %v962_v26 }
 0x105   : > { %v1296_v28 = vsub.f32 0.0, %v1232_v7  ;;  %v1215_v42 = vsub.f32 1.0, %v1183_v22  ;;  %v978_v55 = vmul.f32 %v2019_v59, %v946_v0  ;;  %v929_v48 = vadd.f32 -0.28449672, %v897_v29 }
 0x106   : > { %v1312_v38 = vsel %vm1248_vm2, %v1280_v17, %v1216_v4  ;;  %v1231_v58 = vsub.f32 1.0, %v1199_v40  ;;  %v1026_v44 = vmul.f32 %v2008_v34, %v994_v52  ;;  %v913_v45 = vmul.f32 %v2033_v27, %v881_v31  ;;  %v2081_v4 = vpop.eup %1685 }
 0x107   : > { %v1344_v11 = vadd.f32 1.0, %v1312_v38  ;;  %v1328_v9 = vsel %vm1264_vm3, %v1296_v28, %v1232_v7  ;;  %v1279_v41 = vsub.f32 0.0, %v1215_v42  ;;  %v1010_v61 = vadd.f32 0.2548296, %v978_v55 }
 0x108   : > { %v1360_v43 = vadd.f32 1.0, %v1328_v9  ;;  %v961_v54 = vmul.f32 %v2023_v3, %v929_v48  ;;  %v1295_v14 = vsub.f32 0.0, %v1231_v58  ;;  %v1186_v7 = vmul.f32 %v2029_v19, %v1026_v44 }
 0x109   : > { %v1376_v60 = vmul.f32 %v1344_v11, %v1940_v16  ;;  %v1311_v6 = vsel %vm1247_vm5, %v1279_v41, %v1215_v42  ;;  %v1042_v34 = vmul.f32 %v2019_v59, %v1010_v61  ;;  %v945_v15 = vadd.f32 -0.28449672, %v913_v45 }
 0x10a   : > { %v1392_v5 = vmul.f32 %v1360_v43, %v1956_v32  ;;  %v1343_v16 = vadd.f32 1.0, %v1311_v6  ;;  %v993_v10 = vadd.f32 0.2548296, %v961_v54  ;;  %v1327_v32 = vsel %vm1263_vm6, %v1295_v14, %v1231_v58  ;;  %v1596_v14 = vpop.f32.mrf.mxu0 }
 0x10b   : > { %1409 = vst.msk [vmem:[%s2075_s4 + $0x8] sm:$0xff] %vm1407_vm4, %v1376_v60  ;;  %v1218_v49 = vsub.f32 1.0, %v1186_v7  ;;  %v772_v19 = vmul.f32 1.0614054, %v2059_v35  ;;  %v788_v23 = vmul.f32 1.0614054, %v2081_v4  ;;  %v1202_v59 = vmul.f32 %v2038_v37, %v1042_v34 }
 0x10c   : > { %1425 = vst.msk [vmem:[%s2075_s4 + $0x88] sm:$0xff] %vm1407_vm4, %v1392_v5  ;;  %v1375_v17 = vmul.f32 %v1343_v16, %v1965_v51  ;;  %v1359_v22 = vadd.f32 1.0, %v1327_v32  ;;  %v1025_v25 = vmul.f32 %v2023_v3, %v993_v10  ;;  %v977_v28 = vmul.f32 %v2033_v27, %v945_v15 }
 0x10d   : > { %v1282_v26 = vsub.f32 0.0, %v1218_v49  ;;  %v804_v50 = vadd.f32 -1.4531521, %v772_v19  ;;  %v820_v0 = vadd.f32 -1.4531521, %v788_v23  ;;  %v1234_v31 = vsub.f32 1.0, %v1202_v59 }
 0x10e   : > { %1408 = vst.msk [vmem:[%s2075_s4] sm:$0xff] %vm1407_vm4, %v1375_v17  ;;  %v1391_v29 = vmul.f32 %v1359_v22, %v1971_v56  ;;  %v1185_v38 = vmul.f32 %v2043_v53, %v1025_v25  ;;  %v1076_v51 = vsub.f32 0.0, %v2006_v33  ;;  %v1009_v37 = vadd.f32 0.2548296, %v977_v28  ;;  %v1620_v25 = vpop.f32.mrf.mxu1  ;;  %v414_v28 = vpop.f32.mrf.mxu0 }
 0x10f   : > { %v1314_v42 = vsel %vm1250_vm7, %v1282_v26, %v1218_v49  ;;  %v836_v3 = vmul.f32 %v2059_v35, %v804_v50  ;;  %v852_v40 = vmul.f32 %v2081_v4, %v820_v0  ;;  %v1298_v11 = vsub.f32 0.0, %v1234_v31 }
 0x110   : > { %1424 = vst.msk [vmem:[%s2075_s4 + $0x80] sm:$0xff] %vm1407_vm4, %v1391_v29  ;;  %v1346_v52 = vadd.f32 1.0, %v1314_v42  ;;  %v1217_v9 = vsub.f32 1.0, %v1185_v38  ;;  %v1108_v56 = vmul.f32 %v1076_v51, %v2006_v33  ;;  %v1041_v53 = vmul.f32 %v2033_v27, %v1009_v37 }
 0x111   : > { %v868_v55 = vadd.f32 1.4214138, %v836_v3  ;;  %v884_v48 = vadd.f32 1.4214138, %v852_v40  ;;  %v2116_v8 = vmul.f32 0.70710677, %v1999_v20  ;;  %v1330_v41 = vsel %vm1266_vm8, %v1298_v11, %v1234_v31  ;;  %v494_v40 = vpop.f32.mrf.mxu1 }
 0x112   : > { %v1378_v43 = vmul.f32 %v1346_v52, %v1983_v46  ;;  %v1281_v58 = vsub.f32 0.0, %v1217_v9  ;;  %v1161_v44 = vmul.f32 1.442695, %v1108_v56  ;;  %v1362_v60 = vadd.f32 1.0, %v1330_v41 }
 0x113   : > { %v1201_v61 = vmul.f32 %v2049_v1, %v1041_v53  ;;  %v900_v33 = vmul.f32 %v2059_v35, %v868_v55  ;;  %v916_v27 = vmul.f32 %v2081_v4, %v884_v48  ;;  %v545_v54 = vmul.f32 0.5, %v1937_v12 }
 0x114   : > { %1411 = vst.msk [vmem:[%s2075_s4 + $0x18] sm:$0xff] %vm1407_vm4, %v1378_v43  ;;  %v1313_v46 = vsel %vm1249_vm9, %v1281_v58, %v1217_v9  ;;  %1687 = vpow2.f32 %v1161_v44  ;;  %v611_v18 = vand.u32 2147483647, %v2116_v8  ;;  %v1394_v45 = vmul.f32 %v1362_v60, %v1992_v13 }
 0x115   : > { %v1345_v5 = vadd.f32 1.0, %v1313_v46  ;;  %v1233_v6 = vsub.f32 1.0, %v1201_v61  ;;  %v932_v1 = vadd.f32 -0.28449672, %v900_v33  ;;  %v948_v7 = vadd.f32 -0.28449672, %v916_v27 }
 0x116   : > { %v643_v16 = vmul.f32 0.3275911, %v611_v18  ;;  %1427 = vst.msk [vmem:[%s2075_s4 + $0x98] sm:$0xff] %vm1407_vm4, %v1394_v45  ;;  %v2135_v21 = vmul.f32 0.70710677, %v2012_v39  ;;  %vm1265_vm10 = vcmp.lt.f32.partialorder %v1954_v30, 0.0  ;;  %v2140_v32 = vadd.f32 %v1596_v14, %v1903_v36 }
 0x117   : > { %v1377_v34 = vmul.f32 %v1345_v5, %v545_v54  ;;  %v1297_v10 = vsub.f32 0.0, %v1233_v6  ;;  %v964_v12 = vmul.f32 %v2059_v35, %v932_v1  ;;  %v980_v13 = vmul.f32 %v2081_v4, %v948_v7 }
 0x118   : > { %v675_v15 = vadd.f32 1.0, %v643_v16  ;;  %v627_v23 = vand.u32 2147483647, %v2135_v21  ;;  %v561_v17 = vmul.f32 0.5, %v1950_v24  ;;  %v2148_v0 = vmul.f32 0.70710677, %v2140_v32 }
 0x119   : > { %1410 = vst.msk [vmem:[%s2075_s4 + $0x10] sm:$0xff] %vm1407_vm4, %v1377_v34  ;;  %v1329_v49 = vsel %vm1265_vm10, %v1297_v10, %v1233_v6  ;;  %v996_v19 = vadd.f32 0.2548296, %v964_v12  ;;  %v1012_v59 = vadd.f32 0.2548296, %v980_v13  ;;  %v2152_v38 = vadd.f32 %v1620_v25, %v1903_v36 }
 0x11a   : > { %v1361_v22 = vadd.f32 1.0, %v1329_v49  ;;  %1689 = vrcp.f32 %v675_v15  ;;  %v659_v26 = vmul.f32 0.3275911, %v627_v23  ;;  %v614_v51 = vand.u32 2147483647, %v2148_v0  ;;  %v1599_v15 = vpop.f32.mrf.mxu0  ;;  %v1623_v49 = vpop.f32.mrf.mxu1 }
 0x11b   : > { %v1028_v30 = vmul.f32 %v2059_v35, %v996_v19  ;;  %v1044_v24 = vmul.f32 %v2081_v4, %v1012_v59  ;;  %v2159_v35 = vadd.f32 %v1903_v36, %v414_v28  ;;  %v548_v42 = vmul.f32 0.5, %v1960_v47 }
 0x11c   : > { %v1393_v50 = vmul.f32 %v1361_v22, %v561_v17  ;;  %v691_v31 = vadd.f32 1.0, %v659_v26  ;;  %v1059_v3 = vsub.f32 0.0, %v611_v18  ;;  %vm1252_vm11 = vcmp.lt.f32.partialorder %v1975_v62, 0.0 }
 0x11d   : > { %v1188_v29 = vmul.f32 %v2068_v57, %v1028_v30  ;;  %v564_v57 = vmul.f32 0.5, %v1978_v63  ;;  %v646_v52 = vmul.f32 0.3275911, %v614_v51  ;;  %v2165_v11 = vmul.f32 0.70710677, %v2152_v38 }
 0x11e   : > { %1426 = vst.msk [vmem:[%s2075_s4 + $0x90] sm:$0xff] %vm1407_vm4, %v1393_v50  ;;  %1691 = vrcp.f32 %v691_v31  ;;  %vm1268_vm12 = vcmp.lt.f32.partialorder %v1995_v2, 0.0  ;;  %v1075_v56 = vsub.f32 0.0, %v627_v23  ;;  %v2169_v53 = vmul.f32 0.70710677, %v2159_v35 }
 0x11f   : > { %v1220_v37 = vsub.f32 1.0, %v1188_v29  ;;  %v678_v55 = vadd.f32 1.0, %v646_v52  ;;  %v630_v48 = vand.u32 2147483647, %v2165_v11  ;;  %v2173_v62 = vadd.f32 %v1903_v36, %v494_v40 }
 0x120   : > { %v1091_v43 = vmul.f32 %v1059_v3, %v611_v18  ;;  %v1062_v41 = vsub.f32 0.0, %v614_v51  ;;  %v613_v58 = vand.u32 2147483647, %v2169_v53  ;;  %v2177_v61 = vmul.f32 0.5, %v1999_v20 }
 0x121   : > { %v1688_v4 = vpop.eup %1687  ;;  %v1284_v9 = vsub.f32 0.0, %v1220_v37  ;;  %1693 = vrcp.f32 %v678_v55  ;;  %v1107_v33 = vmul.f32 %v1075_v56, %v627_v23  ;;  %v662_v27 = vmul.f32 0.3275911, %v630_v48 }
 0x122   : > { %v1204_v47 = vmul.f32 %v1688_v4, %v1044_v24  ;;  %v1078_v54 = vsub.f32 0.0, %v630_v48  ;;  %v645_v46 = vmul.f32 0.3275911, %v613_v58  ;;  %v1061_v6 = vsub.f32 0.0, %v613_v58 }
 0x123   : > { %v1316_v63 = vsel %vm1252_vm11, %v1284_v9, %v1220_v37  ;;  %v2180_v1 = vmul.f32 0.70710677, %v2173_v62  ;;  %v1127_v14 = vmul.f32 1.442695, %v1091_v43  ;;  %v1094_v7 = vmul.f32 %v1062_v41, %v614_v51  ;;  %v424_v37 = vpop.f32.mrf.mxu0 }
 0x124   : > { %v1348_v44 = vadd.f32 1.0, %v1316_v63  ;;  %v1236_v60 = vsub.f32 1.0, %v1204_v47  ;;  %v694_v16 = vadd.f32 1.0, %v662_v27  ;;  %v677_v34 = vadd.f32 1.0, %v645_v46 }
 0x125   : > { %v1110_v12 = vmul.f32 %v1078_v54, %v630_v48  ;;  %v629_v13 = vand.u32 2147483647, %v2180_v1  ;;  %v2191_v23 = vmul.f32 0.5, %v2012_v39  ;;  %v1159_v17 = vmul.f32 1.442695, %v1107_v33 }
 0x126   : > { %v1380_v45 = vmul.f32 %v1348_v44, %v548_v42  ;;  %v1300_v5 = vsub.f32 0.0, %v1236_v60  ;;  %1695 = vrcp.f32 %v694_v16  ;;  %v1093_v59 = vmul.f32 %v1061_v6, %v613_v58 }
 0x127   : > { %v2182_v18 = vpop.eup %1689  ;;  %1697 = vrcp.f32 %v677_v34  ;;  %v661_v25 = vmul.f32 0.3275911, %v629_v13  ;;  %v1133_v30 = vmul.f32 1.442695, %v1094_v7  ;;  %v2194_v26 = vadd.f32 %v1599_v15, %v1903_v36  ;;  %v504_v15 = vpop.f32.mrf.mxu1 }
 0x128   : > { %1413 = vst.msk [vmem:[%s2075_s4 + $0x28] sm:$0xff] %vm1407_vm4, %v1380_v45  ;;  %v1332_v20 = vsel %vm1268_vm12, %v1300_v5, %v1236_v60  ;;  %v771_v10 = vmul.f32 1.0614054, %v2182_v18  ;;  %v2197_v28 = vadd.f32 %v1623_v49, %v1903_v36  ;;  %1699 = vpow2.f32 %v1127_v14 }
 0x129   : > { %v1364_v19 = vadd.f32 1.0, %v1332_v20  ;;  %v1165_v29 = vmul.f32 1.442695, %v1110_v12  ;;  %v693_v31 = vadd.f32 1.0, %v661_v25  ;;  %1701 = vpow2.f32 %v1159_v17 }
 0x12a   : > { %v803_v22 = vadd.f32 -1.4531521, %v771_v10  ;;  %v1077_v51 = vsub.f32 0.0, %v629_v13  ;;  %v2206_v42 = vmul.f32 0.70710677, %v2194_v26  ;;  %v2212_v4 = vmul.f32 0.5, %v2140_v32 }
 0x12b   : > { %v1396_v2 = vmul.f32 %v1364_v19, %v564_v57  ;;  %v2199_v50 = vpop.eup %1691  ;;  %v1131_v40 = vmul.f32 1.442695, %v1093_v59  ;;  %1703 = vrcp.f32 %v693_v31  ;;  %v2209_v57 = vmul.f32 0.70710677, %v2197_v28 }
 0x12c   : > { %v835_v39 = vmul.f32 %v2182_v18, %v803_v22  ;;  %v787_v24 = vmul.f32 1.0614054, %v2199_v50  ;;  %1705 = vpow2.f32 %v1133_v30  ;;  %v616_v9 = vand.u32 2147483647, %v2206_v42 }
 0x12d   : > { %1429 = vst.msk [vmem:[%s2075_s4 + $0xa8] sm:$0xff] %vm1407_vm4, %v1396_v2  ;;  %1707 = vpow2.f32 %v1165_v29  ;;  %v632_v47 = vand.u32 2147483647, %v2209_v57  ;;  %v2218_v55 = vadd.f32 %v1903_v36, %v424_v37  ;;  %v1109_v43 = vmul.f32 %v1077_v51, %v629_v13 }
 0x12e   : > { %v867_v3 = vadd.f32 1.4214138, %v835_v39  ;;  %v819_v52 = vadd.f32 -1.4531521, %v787_v24  ;;  %v2220_v48 = vpop.eup %1693  ;;  %v648_v41 = vmul.f32 0.3275911, %v616_v9  ;;  %1709 = vpow2.f32 %v1131_v40 }
 0x12f   : > { %v1064_v58 = vsub.f32 0.0, %v616_v9  ;;  %v774_v44 = vmul.f32 1.0614054, %v2220_v48  ;;  %v664_v60 = vmul.f32 0.3275911, %v632_v47  ;;  %v1080_v46 = vsub.f32 0.0, %v632_v47 }
 0x130   : > { %v899_v56 = vmul.f32 %v2182_v18, %v867_v3  ;;  %v851_v63 = vmul.f32 %v2199_v50, %v819_v52  ;;  %v680_v27 = vadd.f32 1.0, %v648_v41  ;;  %v2226_v14 = vmul.f32 0.70710677, %v2218_v55 }
 0x131   : > { %v1096_v54 = vmul.f32 %v1064_v58, %v616_v9  ;;  %v806_v5 = vadd.f32 -1.4531521, %v774_v44  ;;  %v696_v6 = vadd.f32 1.0, %v664_v60  ;;  %v2230_v16 = vmul.f32 0.5, %v2152_v38 }
 0x132   : > { %v931_v32 = vadd.f32 -0.28449672, %v899_v56  ;;  %v883_v33 = vadd.f32 1.4214138, %v851_v63  ;;  %v1163_v34 = vmul.f32 1.442695, %v1109_v43  ;;  %1711 = vrcp.f32 %v680_v27 }
 0x133   : > { %v2232_v20 = vpop.eup %1695  ;;  %v838_v12 = vmul.f32 %v2220_v48, %v806_v5  ;;  %1713 = vrcp.f32 %v696_v6  ;;  %v615_v13 = vand.u32 2147483647, %v2226_v14  ;;  %vm1251_vm13 = vcmp.lt.f32.partialorder %v2116_v8, 0.0 }
 0x134   : > { %v963_v45 = vmul.f32 %v2182_v18, %v931_v32  ;;  %v915_v7 = vmul.f32 %v2199_v50, %v883_v33  ;;  %v2236_v49 = vpop.eup %1697  ;;  %v790_v17 = vmul.f32 1.0614054, %v2232_v20  ;;  %v1137_v38 = vmul.f32 1.442695, %v1096_v54 }
 0x135   : > { %v1112_v22 = vmul.f32 %v1080_v46, %v632_v47  ;;  %v870_v25 = vadd.f32 1.4214138, %v838_v12  ;;  %v773_v2 = vmul.f32 1.0614054, %v2236_v49  ;;  %v647_v30 = vmul.f32 0.3275911, %v615_v13  ;;  %v1700_v39 = vpop.eup %1699 }
 0x136   : > { %v995_v10 = vadd.f32 0.2548296, %v963_v45  ;;  %v947_v19 = vadd.f32 -0.28449672, %v915_v7  ;;  %v822_v31 = vadd.f32 -1.4531521, %v790_v17  ;;  %1715 = vpow2.f32 %v1163_v34  ;;  %v1702_v51 = vpop.eup %1701 }
 0x137   : > { %v2244_v24 = vadd.f32 %v1903_v36, %v504_v15  ;;  %v902_v3 = vmul.f32 %v2220_v48, %v870_v25  ;;  %v805_v40 = vadd.f32 -1.4531521, %v773_v2  ;;  %v679_v52 = vadd.f32 1.0, %v647_v30 }
 0x138   : > { %v1027_v59 = vmul.f32 %v2182_v18, %v995_v10  ;;  %v979_v29 = vmul.f32 %v2199_v50, %v947_v19  ;;  %v2247_v9 = vpop.eup %1703  ;;  %v854_v56 = vmul.f32 %v2232_v20, %v822_v31  ;;  %1717 = vpow2.f32 %v1137_v38 }
 0x139   : > { %v1169_v47 = vmul.f32 1.442695, %v1112_v22  ;;  %v1706_v63 = vpop.eup %1705  ;;  %vm1267_vm14 = vcmp.lt.f32.partialorder %v2135_v21, 0.0  ;;  %v934_v41 = vadd.f32 -0.28449672, %v902_v3  ;;  %v837_v36 = vmul.f32 %v2236_v49, %v805_v40 }
 0x13a   : > { %v1187_v37 = vmul.f32 %v1700_v39, %v1027_v59  ;;  %v1011_v18 = vadd.f32 0.2548296, %v979_v29  ;;  %v789_v58 = vmul.f32 1.0614054, %v2247_v9  ;;  %v1708_v32 = vpop.eup %1707  ;;  %v886_v60 = vadd.f32 1.4214138, %v854_v56 }
 0x13b   : > { %1719 = vrcp.f32 %v679_v52  ;;  %v1063_v33 = vsub.f32 0.0, %v615_v13  ;;  %v966_v54 = vmul.f32 %v2220_v48, %v934_v41  ;;  %v869_v46 = vadd.f32 1.4214138, %v837_v36  ;;  %v1710_v5 = vpop.eup %1709 }
 0x13c   : > { %v1219_v43 = vsub.f32 1.0, %v1187_v37  ;;  %v1043_v44 = vmul.f32 %v2199_v50, %v1011_v18  ;;  %v821_v45 = vadd.f32 -1.4531521, %v789_v58  ;;  %v918_v7 = vmul.f32 %v2232_v20, %v886_v60 }
 0x13d   : > { %v2257_v34 = vmul.f32 0.5, %v2159_v35  ;;  %1721 = vpow2.f32 %v1169_v47  ;;  %v998_v50 = vadd.f32 0.2548296, %v966_v54  ;;  %v901_v12 = vmul.f32 %v2236_v49, %v869_v46 }
 0x13e   : > { %v1283_v27 = vsub.f32 0.0, %v1219_v43  ;;  %v1203_v6 = vmul.f32 %v1702_v51, %v1043_v44  ;;  %v853_v15 = vmul.f32 %v2247_v9, %v821_v45  ;;  %vm1254_vm15 = vcmp.lt.f32.partialorder %v2148_v0, 0.0 }
 0x13f   : > { %v950_v38 = vadd.f32 -0.28449672, %v918_v7  ;;  %v2265_v22 = vmul.f32 0.70710677, %v2244_v24  ;;  %v2267_v35 = vpop.eup %1711  ;;  %v1030_v59 = vmul.f32 %v2220_v48, %v998_v50  ;;  %v933_v8 = vadd.f32 -0.28449672, %v901_v12 }
 0x140   : > { %v1315_v10 = vsel %vm1251_vm13, %v1283_v27, %v1219_v43  ;;  %v1235_v17 = vsub.f32 1.0, %v1203_v6  ;;  %v885_v25 = vadd.f32 1.4214138, %v853_v15  ;;  %v1095_v2 = vmul.f32 %v1063_v33, %v615_v13  ;;  %v2270_v30 = vpop.eup %1713 }
 0x141   : > { %v1347_v19 = vadd.f32 1.0, %v1315_v10  ;;  %v982_v31 = vmul.f32 %v2232_v20, %v950_v38  ;;  %v776_v51 = vmul.f32 1.0614054, %v2267_v35  ;;  %v1190_v37 = vmul.f32 %v1706_v63, %v1030_v59 }
 0x142   : > { %v1299_v29 = vsub.f32 0.0, %v1235_v17  ;;  %v965_v3 = vmul.f32 %v2236_v49, %v933_v8  ;;  %v917_v40 = vmul.f32 %v2247_v9, %v885_v25  ;;  %v792_v52 = vmul.f32 1.0614054, %v2270_v30 }
 0x143   : > { %v1379_v39 = vmul.f32 %v1347_v19, %v2177_v61  ;;  %v1014_v13 = vadd.f32 0.2548296, %v982_v31  ;;  %v808_v18 = vadd.f32 -1.4531521, %v776_v51  ;;  %v2283_v61 = vand.u32 2147483647, %v2265_v22  ;;  %v1716_v56 = vpop.eup %1715 }
 0x144   : > { %v1331_v48 = vsel %vm1267_vm14, %v1299_v29, %v1235_v17  ;;  %v1222_v43 = vsub.f32 1.0, %v1190_v37  ;;  %vm1270_vm0 = vcmp.lt.f32.partialorder %v2165_v11, 0.0  ;;  %v997_v63 = vadd.f32 0.2548296, %v965_v3 }
 0x145   : > { %1412 = vst.msk [vmem:[%s2075_s4 + $0x20] sm:$0xff] %vm1407_vm4, %v1379_v39  ;;  %v1363_v47 = vadd.f32 1.0, %v1331_v48  ;;  %v949_v41 = vadd.f32 -0.28449672, %v917_v40  ;;  %v1046_v36 = vmul.f32 %v2232_v20, %v1014_v13  ;;  %vm1253_vm1 = vcmp.lt.f32.partialorder %v2169_v53, 0.0  ;;  %v2290_v60 = vpop.eup %1717  ;;  %v1602_v39 = vpop.f32.mrf.mxu0 }
 0x146   : > { %v840_v21 = vmul.f32 %v2267_v35, %v808_v18  ;;  %v824_v58 = vadd.f32 -1.4531521, %v792_v52  ;;  %v663_v44 = vmul.f32 0.3275911, %v2283_v61  ;;  %v1286_v27 = vsub.f32 0.0, %v1222_v43 }
 0x147   : > { %v1395_v33 = vmul.f32 %v1363_v47, %v2191_v23  ;;  %v1029_v54 = vmul.f32 %v2236_v49, %v997_v63  ;;  %v981_v46 = vmul.f32 %v2247_v9, %v949_v41  ;;  %v1206_v45 = vmul.f32 %v1708_v32, %v1046_v36  ;;  %v1626_v41 = vpop.f32.mrf.mxu1 }
 0x148   : > { %v872_v6 = vadd.f32 1.4214138, %v840_v21  ;;  %v856_v20 = vmul.f32 %v2270_v30, %v824_v58  ;;  %v695_v7 = vadd.f32 1.0, %v663_v44  ;;  %v2296_v10 = vpop.eup %1719  ;;  %v1318_v50 = vsel %vm1254_vm15, %v1286_v27, %v1222_v43 }
 0x149   : > { %1428 = vst.msk [vmem:[%s2075_s4 + $0xa0] sm:$0xff] %vm1407_vm4, %v1395_v33  ;;  %v1189_v12 = vmul.f32 %v1710_v5, %v1029_v54  ;;  %v1013_v15 = vadd.f32 0.2548296, %v981_v46  ;;  %v1135_v23 = vmul.f32 1.442695, %v1095_v2  ;;  %v1350_v19 = vadd.f32 1.0, %v1318_v50 }
 0x14a   : > { %v1238_v17 = vsub.f32 1.0, %v1206_v45  ;;  %v904_v49 = vmul.f32 %v2267_v35, %v872_v6  ;;  %v888_v32 = vadd.f32 1.4214138, %v856_v20  ;;  %v1722_v38 = vpop.eup %1721  ;;  %v775_v25 = vmul.f32 1.0614054, %v2296_v10 }
 0x14b   : > { %v1221_v59 = vsub.f32 1.0, %v1189_v12  ;;  %v1045_v8 = vmul.f32 %v2247_v9, %v1013_v15  ;;  %1723 = vrcp.f32 %v695_v7  ;;  %v1382_v0 = vmul.f32 %v1350_v19, %v2212_v4  ;;  %v2315_v4 = vld [vmem:[%s2605_s2] ss:$0 sm:$0xff] }
 0x14c   : > { %v1302_v29 = vsub.f32 0.0, %v1238_v17  ;;  %v936_v5 = vadd.f32 -0.28449672, %v904_v49  ;;  %v920_v2 = vmul.f32 %v2270_v30, %v888_v32  ;;  %v807_v37 = vadd.f32 -1.4531521, %v775_v25 }
 0x14d   : > { %v1285_v31 = vsub.f32 0.0, %v1221_v59  ;;  %v1205_v51 = vmul.f32 %v1716_v56, %v1045_v8  ;;  %1725 = vpow2.f32 %v1135_v23  ;;  %1415 = vst.msk [vmem:[%s2075_s4 + $0x38] sm:$0xff] %vm1407_vm4, %v1382_v0  ;;  %v2318_v52 = vadd.f32 %v2315_v4, %v1602_v39 }
 0x14e   : > { %v1334_v3 = vsel %vm1270_vm0, %v1302_v29, %v1238_v17  ;;  %v968_v9 = vmul.f32 %v2267_v35, %v936_v5  ;;  %v952_v40 = vadd.f32 -0.28449672, %v920_v2  ;;  %v839_v11 = vmul.f32 %v2296_v10, %v807_v37  ;;  %v434_v17 = vpop.f32.mrf.mxu0 }
 0x14f   : > { %v1366_v48 = vadd.f32 1.0, %v1334_v3  ;;  %v1317_v13 = vsel %vm1253_vm1, %v1285_v31, %v1221_v59  ;;  %v1237_v18 = vsub.f32 1.0, %v1205_v51  ;;  %v1079_v63 = vsub.f32 0.0, %v2283_v61  ;;  %v514_v51 = vpop.f32.mrf.mxu1 }
 0x150   : > { %v1349_v56 = vadd.f32 1.0, %v1317_v13  ;;  %v1000_v47 = vadd.f32 0.2548296, %v968_v9  ;;  %v984_v43 = vmul.f32 %v2270_v30, %v952_v40  ;;  %v565_v21 = vmul.f32 0.5, %v2173_v62 }
 0x151   : > { %v1398_v36 = vmul.f32 %v1366_v48, %v2230_v16  ;;  %v1301_v58 = vsub.f32 0.0, %v1237_v18  ;;  %v871_v44 = vadd.f32 1.4214138, %v839_v11  ;;  %vm1269_vm2 = vcmp.lt.f32.partialorder %v2180_v1, 0.0 }
 0x152   : > { %v1381_v53 = vmul.f32 %v1349_v56, %v2257_v34  ;;  %v1032_v33 = vmul.f32 %v2267_v35, %v1000_v47  ;;  %v1016_v27 = vadd.f32 0.2548296, %v984_v43  ;;  %v2334_v45 = vmul.f32 0.70710677, %v2318_v52  ;;  %v1605_v47 = vpop.f32.mrf.mxu0 }
 0x153   : > { %1431 = vst.msk [vmem:[%s2075_s4 + $0xb8] sm:$0xff] %vm1407_vm4, %v1398_v36  ;;  %v1333_v54 = vsel %vm1269_vm2, %v1301_v58, %v1237_v18  ;;  %v903_v46 = vmul.f32 %v2296_v10, %v871_v44  ;;  %v2337_v16 = vadd.f32 %v2315_v4, %v1626_v41  ;;  %v1111_v35 = vmul.f32 %v1079_v63, %v2283_v61 }
 0x154   : > { %1414 = vst.msk [vmem:[%s2075_s4 + $0x30] sm:$0xff] %vm1407_vm4, %v1381_v53  ;;  %v1365_v62 = vadd.f32 1.0, %v1333_v54  ;;  %v1192_v1 = vmul.f32 %v2290_v60, %v1032_v33  ;;  %v1048_v34 = vmul.f32 %v2270_v30, %v1016_v27  ;;  %v618_v20 = vand.u32 2147483647, %v2334_v45  ;;  %v1629_v53 = vpop.f32.mrf.mxu1 }
 0x155   : > { %v935_v6 = vadd.f32 -0.28449672, %v903_v46  ;;  %v2346_v15 = vmul.f32 0.70710677, %v2337_v16  ;;  %v552_v23 = vmul.f32 0.5, %v2194_v26  ;;  %vm1256_vm3 = vcmp.lt.f32.partialorder %v2206_v42, 0.0 }
 0x156   : > { %v1397_v7 = vmul.f32 %v1365_v62, %v565_v21  ;;  %v1224_v50 = vsub.f32 1.0, %v1192_v1  ;;  %v1208_v12 = vmul.f32 %v1722_v38, %v1048_v34  ;;  %v650_v60 = vmul.f32 0.3275911, %v618_v20 }
 0x157   : > { %v967_v19 = vmul.f32 %v2296_v10, %v935_v6  ;;  %v1167_v32 = vmul.f32 1.442695, %v1111_v35  ;;  %v634_v38 = vand.u32 2147483647, %v2346_v15  ;;  %vm1272_vm5 = vcmp.lt.f32.partialorder %v2209_v57, 0.0 }
 0x158   : > { %v2351_v30 = vpop.eup %1723  ;;  %1430 = vst.msk [vmem:[%s2075_s4 + $0xb0] sm:$0xff] %vm1407_vm4, %v1397_v7  ;;  %v1288_v61 = vsub.f32 0.0, %v1224_v50  ;;  %v1240_v49 = vsub.f32 1.0, %v1208_v12  ;;  %v682_v8 = vadd.f32 1.0, %v650_v60  ;;  %v2359_v29 = vadd.f32 %v2315_v4, %v434_v17 }
 0x159   : > { %v999_v59 = vadd.f32 0.2548296, %v967_v19  ;;  %v791_v26 = vmul.f32 1.0614054, %v2351_v30  ;;  %v666_v0 = vmul.f32 0.3275911, %v634_v38  ;;  %v2380_v44 = vadd.f32 %v2315_v4, %v1605_v47 }
 0x15a   : > { %v1726_v42 = vpop.eup %1725  ;;  %v1320_v25 = vsel %vm1256_vm3, %v1288_v61, %v1224_v50  ;;  %v1304_v39 = vsub.f32 0.0, %v1240_v49  ;;  %1727 = vrcp.f32 %v682_v8  ;;  %v568_v57 = vmul.f32 0.5, %v2197_v28  ;;  %v444_v50 = vpop.f32.mrf.mxu0 }
 0x15b   : > { %v1352_v5 = vadd.f32 1.0, %v1320_v25  ;;  %v1031_v2 = vmul.f32 %v2296_v10, %v999_v59  ;;  %v823_v31 = vadd.f32 -1.4531521, %v791_v26  ;;  %1729 = vpow2.f32 %v1167_v32 }
 0x15c   : > { %v1336_v37 = vsel %vm1272_vm5, %v1304_v39, %v1240_v49  ;;  %v698_v3 = vadd.f32 1.0, %v666_v0  ;;  %v1066_v18 = vsub.f32 0.0, %v618_v20  ;;  %v1082_v11 = vsub.f32 0.0, %v634_v38 }
 0x15d   : > { %v1384_v9 = vmul.f32 %v1352_v5, %v552_v23  ;;  %v1368_v40 = vadd.f32 1.0, %v1336_v37  ;;  %v1191_v48 = vmul.f32 %v1726_v42, %v1031_v2  ;;  %v855_v13 = vmul.f32 %v2351_v30, %v823_v31 }
 0x15e   : > { %v2365_v56 = vmul.f32 0.70710677, %v2359_v29  ;;  %v2368_v10 = vadd.f32 %v2315_v4, %v514_v51  ;;  %1731 = vrcp.f32 %v698_v3  ;;  %vm1255_vm6 = vcmp.lt.f32.partialorder %v2226_v14, 0.0 }
 0x15f   : > { %1417 = vst.msk [vmem:[%s2075_s4 + $0x48] sm:$0xff] %vm1407_vm4, %v1384_v9  ;;  %v1400_v28 = vmul.f32 %v1368_v40, %v568_v57  ;;  %v1223_v43 = vsub.f32 1.0, %v1191_v48  ;;  %v887_v63 = vadd.f32 1.4214138, %v855_v13  ;;  %v1098_v33 = vmul.f32 %v1066_v18, %v618_v20 }
 0x160   : > { %v617_v41 = vand.u32 2147483647, %v2365_v56  ;;  %v2377_v58 = vmul.f32 0.70710677, %v2368_v10  ;;  %v1114_v27 = vmul.f32 %v1082_v11, %v634_v38  ;;  %v551_v34 = vmul.f32 0.5, %v2218_v55 }
 0x161   : > { %1433 = vst.msk [vmem:[%s2075_s4 + $0xc8] sm:$0xff] %vm1407_vm4, %v1400_v28  ;;  %v1287_v36 = vsub.f32 0.0, %v1223_v43  ;;  %v919_v21 = vmul.f32 %v2351_v30, %v887_v63  ;;  %v2386_v7 = vadd.f32 %v2315_v4, %v1629_v53  ;;  %v2389_v12 = vmul.f32 0.5, %v2244_v24 }
 0x162   : > { %v649_v54 = vmul.f32 0.3275911, %v617_v41  ;;  %v633_v1 = vand.u32 2147483647, %v2377_v58  ;;  %v2393_v23 = vmul.f32 0.70710677, %v2380_v44  ;;  %v2397_v32 = vadd.f32 %v2315_v4, %v444_v50 }
 0x163   : > { %v1319_v46 = vsel %vm1255_vm6, %v1287_v36, %v1223_v43  ;;  %v951_v62 = vadd.f32 -0.28449672, %v919_v21  ;;  %v1141_v60 = vmul.f32 1.442695, %v1098_v33  ;;  %v1173_v17 = vmul.f32 1.442695, %v1114_v27  ;;  %v524_v27 = vpop.f32.mrf.mxu1 }
 0x164   : > { %v1351_v35 = vadd.f32 1.0, %v1319_v46  ;;  %v681_v6 = vadd.f32 1.0, %v649_v54  ;;  %v665_v20 = vmul.f32 0.3275911, %v633_v1  ;;  %v620_v49 = vand.u32 2147483647, %v2393_v23  ;;  %v1608_v54 = vpop.f32.mrf.mxu0 }
 0x165   : > { %v983_v14 = vmul.f32 %v2351_v30, %v951_v62  ;;  %vm1271_vm7 = vcmp.lt.f32.partialorder %v2265_v22, 0.0  ;;  %v2405_v24 = vmul.f32 0.5, %v2318_v52  ;;  %v2408_v59 = vmul.f32 0.5, %v2337_v16 }
 0x166   : > { %v1383_v19 = vmul.f32 %v1351_v35, %v551_v34  ;;  %1733 = vrcp.f32 %v681_v6  ;;  %v697_v61 = vadd.f32 1.0, %v665_v20  ;;  %v1065_v26 = vsub.f32 0.0, %v617_v41 }
 0x167   : > { %v1015_v55 = vadd.f32 0.2548296, %v983_v14  ;;  %v2399_v38 = vpop.eup %1727  ;;  %v2411_v8 = vmul.f32 0.70710677, %v2386_v7  ;;  %v2416_v0 = vmul.f32 0.5, %v2359_v29  ;;  %v1081_v5 = vsub.f32 0.0, %v633_v1 }
 0x168   : > { %1416 = vst.msk [vmem:[%s2075_s4 + $0x40] sm:$0xff] %vm1407_vm4, %v1383_v19  ;;  %v1730_v42 = vpop.eup %1729  ;;  %v778_v39 = vmul.f32 1.0614054, %v2399_v38  ;;  %1735 = vrcp.f32 %v697_v61  ;;  %v652_v52 = vmul.f32 0.3275911, %v620_v49  ;;  %v1068_v3 = vsub.f32 0.0, %v620_v49 }
 0x169   : > { %v1047_v25 = vmul.f32 %v2351_v30, %v1015_v55  ;;  %1737 = vpow2.f32 %v1141_v60  ;;  %v636_v2 = vand.u32 2147483647, %v2411_v8  ;;  %v2420_v51 = vmul.f32 0.70710677, %v2397_v32 }
 0x16a   : > { %v810_v31 = vadd.f32 -1.4531521, %v778_v39  ;;  %1739 = vpow2.f32 %v1173_v17  ;;  %v1097_v30 = vmul.f32 %v1065_v26, %v617_v41  ;;  %v684_v37 = vadd.f32 1.0, %v652_v52 }
 0x16b   : > { %v1207_v16 = vmul.f32 %v1730_v42, %v1047_v25  ;;  %v2422_v57 = vpop.eup %1731  ;;  %v668_v9 = vmul.f32 0.3275911, %v636_v2  ;;  %v619_v13 = vand.u32 2147483647, %v2420_v51  ;;  %v1113_v18 = vmul.f32 %v1081_v5, %v633_v1 }
 0x16c   : > { %v842_v40 = vmul.f32 %v2399_v38, %v810_v31  ;;  %v794_v48 = vmul.f32 1.0614054, %v2422_v57  ;;  %1741 = vrcp.f32 %v684_v37  ;;  %v1084_v47 = vsub.f32 0.0, %v636_v2 }
 0x16d   : > { %v1239_v29 = vsub.f32 1.0, %v1207_v16  ;;  %v700_v11 = vadd.f32 1.0, %v668_v9  ;;  %v2428_v36 = vmul.f32 0.5, %v2368_v10  ;;  %v1139_v41 = vmul.f32 1.442695, %v1097_v30 }
 0x16e   : > { %v874_v43 = vadd.f32 1.4214138, %v842_v40  ;;  %v826_v63 = vadd.f32 -1.4531521, %v794_v48  ;;  %v1100_v21 = vmul.f32 %v1068_v3, %v620_v49  ;;  %v651_v53 = vmul.f32 0.3275911, %v619_v13 }
 0x16f   : > { %v1303_v28 = vsub.f32 0.0, %v1239_v29  ;;  %v1067_v33 = vsub.f32 0.0, %v619_v13  ;;  %1743 = vrcp.f32 %v700_v11  ;;  %v1171_v35 = vmul.f32 1.442695, %v1113_v18 }
 0x170   : > { %v906_v62 = vmul.f32 %v2399_v38, %v874_v43  ;;  %v858_v1 = vmul.f32 %v2422_v57, %v826_v63  ;;  %v1116_v6 = vmul.f32 %v1084_v47, %v636_v2  ;;  %v683_v10 = vadd.f32 1.0, %v651_v53 }
 0x171   : > { %v1335_v46 = vsel %vm1271_vm7, %v1303_v28, %v1239_v29  ;;  %v2437_v19 = vadd.f32 %v2315_v4, %v524_v27  ;;  %v2440_v22 = vadd.f32 %v2315_v4, %v1608_v54  ;;  %v1145_v55 = vmul.f32 1.442695, %v1100_v21 }
 0x172   : > { %v1367_v34 = vadd.f32 1.0, %v1335_v46  ;;  %v938_v14 = vadd.f32 -0.28449672, %v906_v62  ;;  %v890_v20 = vadd.f32 1.4214138, %v858_v1  ;;  %1745 = vrcp.f32 %v683_v10 }
 0x173   : > { %v2434_v50 = vpop.eup %1733  ;;  %v1099_v26 = vmul.f32 %v1067_v33, %v619_v13  ;;  %v2447_v42 = vmul.f32 0.70710677, %v2437_v19  ;;  %1747 = vpow2.f32 %v1139_v41  ;;  %v1177_v5 = vmul.f32 1.442695, %v1116_v6 }
 0x174   : > { %v1399_v60 = vmul.f32 %v1367_v34, %v2389_v12  ;;  %v777_v17 = vmul.f32 1.0614054, %v2434_v50  ;;  %v970_v61 = vmul.f32 %v2399_v38, %v938_v14  ;;  %v922_v49 = vmul.f32 %v2422_v57, %v890_v20 }
 0x175   : > { %v2449_v25 = vpop.eup %1735  ;;  %v2454_v12 = vmul.f32 0.70710677, %v2440_v22  ;;  %1749 = vpow2.f32 %v1171_v35  ;;  %vm1258_vm8 = vcmp.lt.f32.partialorder %v2334_v45, 0.0  ;;  %v635_v3 = vand.u32 2147483647, %v2447_v42 }
 0x176   : > { %1432 = vst.msk [vmem:[%s2075_s4 + $0xc0] sm:$0xff] %vm1407_vm4, %v1399_v60  ;;  %v809_v39 = vadd.f32 -1.4531521, %v777_v17  ;;  %v1738_v52 = vpop.eup %1737  ;;  %v1002_v2 = vadd.f32 0.2548296, %v970_v61  ;;  %1751 = vpow2.f32 %v1145_v55  ;;  %v2466_v11 = vmul.f32 0.5, %v2380_v44 }
 0x177   : > { %v954_v16 = vadd.f32 -0.28449672, %v922_v49  ;;  %v793_v31 = vmul.f32 1.0614054, %v2449_v25  ;;  %v1740_v30 = vpop.eup %1739  ;;  %v2461_v9 = vand.u32 2147483647, %v2454_v12  ;;  %1753 = vpow2.f32 %v1177_v5 }
 0x178   : > { %v841_v37 = vmul.f32 %v2434_v50, %v809_v39  ;;  %v1034_v29 = vmul.f32 %v2399_v38, %v1002_v2  ;;  %v1143_v13 = vmul.f32 1.442695, %v1099_v26  ;;  %v667_v47 = vmul.f32 0.3275911, %v635_v3 }
 0x179   : > { %v986_v40 = vmul.f32 %v2422_v57, %v954_v16  ;;  %v825_v48 = vadd.f32 -1.4531521, %v793_v31  ;;  %v2468_v28 = vpop.eup %1741  ;;  %v654_v21 = vmul.f32 0.3275911, %v2461_v9  ;;  %vm1274_vm9 = vcmp.lt.f32.partialorder %v2346_v15, 0.0 }
 0x17a   : > { %v873_v18 = vadd.f32 1.4214138, %v841_v37  ;;  %v1194_v43 = vmul.f32 %v1738_v52, %v1034_v29  ;;  %v780_v53 = vmul.f32 1.0614054, %v2468_v28  ;;  %v699_v33 = vadd.f32 1.0, %v667_v47  ;;  %v1632_v52 = vpop.f32.mrf.mxu1 }
 0x17b   : > { %v1018_v63 = vadd.f32 0.2548296, %v986_v40  ;;  %v857_v41 = vmul.f32 %v2449_v25, %v825_v48  ;;  %v1083_v27 = vsub.f32 0.0, %v635_v3  ;;  %1755 = vpow2.f32 %v1143_v13 }
 0x17c   : > { %v905_v38 = vmul.f32 %v2434_v50, %v873_v18  ;;  %v1226_v44 = vsub.f32 1.0, %v1194_v43  ;;  %v2476_v62 = vpop.eup %1743  ;;  %v812_v34 = vadd.f32 -1.4531521, %v780_v53  ;;  %1757 = vrcp.f32 %v699_v33 }
 0x17d   : > { %v1050_v54 = vmul.f32 %v2422_v57, %v1018_v63  ;;  %v889_v46 = vadd.f32 1.4214138, %v857_v41  ;;  %v686_v35 = vadd.f32 1.0, %v654_v21  ;;  %v796_v20 = vmul.f32 1.0614054, %v2476_v62 }
 0x17e   : > { %v937_v1 = vadd.f32 -0.28449672, %v905_v38  ;;  %v1290_v6 = vsub.f32 0.0, %v1226_v44  ;;  %v844_v17 = vmul.f32 %v2468_v28, %v812_v34  ;;  %v1115_v55 = vmul.f32 %v1083_v27, %v635_v3 }
 0x17f   : > { %v1210_v10 = vmul.f32 %v1740_v30, %v1050_v54  ;;  %v921_v14 = vmul.f32 %v2449_v25, %v889_v46  ;;  %v1070_v57 = vsub.f32 0.0, %v2461_v9  ;;  %v2483_v61 = vpop.eup %1745  ;;  %v828_v5 = vadd.f32 -1.4531521, %v796_v20 }
 0x180   : > { %v969_v60 = vmul.f32 %v2434_v50, %v937_v1  ;;  %v1322_v49 = vsel %vm1258_vm8, %v1290_v6, %v1226_v44  ;;  %v876_v31 = vadd.f32 1.4214138, %v844_v17  ;;  %1759 = vrcp.f32 %v686_v35  ;;  %v1748_v30 = vpop.eup %1747 }
 0x181   : > { %v1242_v26 = vsub.f32 1.0, %v1210_v10  ;;  %v953_v39 = vadd.f32 -0.28449672, %v921_v14  ;;  %v1354_v2 = vadd.f32 1.0, %v1322_v49  ;;  %vm1257_vm10 = vcmp.lt.f32.partialorder %v2365_v56, 0.0 }
 0x182   : > { %v1001_v16 = vadd.f32 0.2548296, %v969_v60  ;;  %v860_v29 = vmul.f32 %v2476_v62, %v828_v5  ;;  %v779_v45 = vmul.f32 1.0614054, %v2483_v61  ;;  %v1750_v40 = vpop.eup %1749  ;;  %v908_v18 = vmul.f32 %v2468_v28, %v876_v31 }
 0x183   : > { %v1306_v37 = vsub.f32 0.0, %v1242_v26  ;;  %v985_v3 = vmul.f32 %v2449_v25, %v953_v39  ;;  %v1386_v48 = vmul.f32 %v1354_v2, %v2405_v24  ;;  %v2495_v47 = vadd.f32 %v2315_v4, %v1632_v52  ;;  %v1752_v43 = vpop.eup %1751  ;;  %v454_v39 = vpop.f32.mrf.mxu0 }
 0x184   : > { %v1033_v13 = vmul.f32 %v2434_v50, %v1001_v16  ;;  %v892_v21 = vadd.f32 1.4214138, %v860_v29  ;;  %v811_v38 = vadd.f32 -1.4531521, %v779_v45  ;;  %vm1273_vm11 = vcmp.lt.f32.partialorder %v2377_v58, 0.0  ;;  %v1754_v27 = vpop.eup %1753 }
 0x185   : > { %v1338_v63 = vsel %vm1274_vm9, %v1306_v37, %v1242_v26  ;;  %v1017_v41 = vadd.f32 0.2548296, %v985_v3  ;;  %1419 = vst.msk [vmem:[%s2075_s4 + $0x58] sm:$0xff] %vm1407_vm4, %v1386_v48  ;;  %v940_v24 = vadd.f32 -0.28449672, %v908_v18  ;;  %v1102_v46 = vmul.f32 %v1070_v57, %v2461_v9 }
 0x186   : > { %v1370_v53 = vadd.f32 1.0, %v1338_v63  ;;  %v1193_v33 = vmul.f32 %v1748_v30, %v1033_v13  ;;  %v1175_v50 = vmul.f32 1.442695, %v1115_v55  ;;  %v924_v54 = vmul.f32 %v2476_v62, %v892_v21 }
 0x187   : > { %v1049_v44 = vmul.f32 %v2449_v25, %v1017_v41  ;;  %v843_v15 = vmul.f32 %v2483_v61, %v811_v38  ;;  %v972_v35 = vmul.f32 %v2468_v28, %v940_v24  ;;  %v2509_v6 = vmul.f32 0.70710677, %v2495_v47 }
 0x188   : > { %v1402_v1 = vmul.f32 %v1370_v53, %v2408_v59  ;;  %v1225_v34 = vsub.f32 1.0, %v1193_v33  ;;  %v2512_v14 = vmul.f32 0.5, %v2386_v7  ;;  %v956_v20 = vadd.f32 -0.28449672, %v924_v54  ;;  %v1756_v60 = vpop.eup %1755 }
 0x189   : > { %v1209_v10 = vmul.f32 %v1750_v40, %v1049_v44  ;;  %v875_v25 = vadd.f32 1.4214138, %v843_v15  ;;  %v1004_v55 = vadd.f32 0.2548296, %v972_v35  ;;  %1761 = vpow2.f32 %v1175_v50  ;;  %v2519_v9 = vpop.eup %1757  ;;  %v534_v50 = vpop.f32.mrf.mxu1 }
 0x18a   : > { %1435 = vst.msk [vmem:[%s2075_s4 + $0xd8] sm:$0xff] %vm1407_vm4, %v1402_v1  ;;  %v1289_v17 = vsub.f32 0.0, %v1225_v34  ;;  %v2517_v59 = vand.u32 2147483647, %v2509_v6  ;;  %v988_v49 = vmul.f32 %v2476_v62, %v956_v20  ;;  %v1149_v7 = vmul.f32 1.442695, %v1102_v46 }
 0x18b   : > { %v1241_v57 = vsub.f32 1.0, %v1209_v10  ;;  %v907_v26 = vmul.f32 %v2483_v61, %v875_v25  ;;  %v1036_v52 = vmul.f32 %v2468_v28, %v1004_v55  ;;  %v795_v2 = vmul.f32 1.0614054, %v2519_v9 }
 0x18c   : > { %v1321_v5 = vsel %vm1257_vm10, %v1289_v17, %v1225_v34  ;;  %v670_v16 = vmul.f32 0.3275911, %v2517_v59  ;;  %v1020_v37 = vadd.f32 0.2548296, %v988_v49  ;;  %v2529_v48 = vadd.f32 %v2315_v4, %v454_v39 }
 0x18d   : > { %v1353_v31 = vadd.f32 1.0, %v1321_v5  ;;  %v1305_v30 = vsub.f32 0.0, %v1241_v57  ;;  %v939_v3 = vadd.f32 -0.28449672, %v907_v26  ;;  %v1196_v29 = vmul.f32 %v1752_v43, %v1036_v52  ;;  %v2531_v13 = vpop.eup %1759 }
 0x18e   : > { %v827_v45 = vadd.f32 -1.4531521, %v795_v2  ;;  %v702_v40 = vadd.f32 1.0, %v670_v16  ;;  %v1052_v18 = vmul.f32 %v2476_v62, %v1020_v37  ;;  %v782_v38 = vmul.f32 1.0614054, %v2531_v13 }
 0x18f   : > { %v1385_v56 = vmul.f32 %v1353_v31, %v2416_v0  ;;  %v1337_v28 = vsel %vm1273_vm11, %v1305_v30, %v1241_v57  ;;  %v971_v63 = vmul.f32 %v2483_v61, %v939_v3  ;;  %v1228_v21 = vsub.f32 1.0, %v1196_v29 }
 0x190   : > { %v1369_v41 = vadd.f32 1.0, %v1337_v28  ;;  %v859_v43 = vmul.f32 %v2519_v9, %v827_v45  ;;  %vm1260_vm12 = vcmp.lt.f32.partialorder %v2393_v23, 0.0  ;;  %v1212_v53 = vmul.f32 %v1754_v27, %v1052_v18 }
 0x191   : > { %1418 = vst.msk [vmem:[%s2075_s4 + $0x50] sm:$0xff] %vm1407_vm4, %v1385_v56  ;;  %v1003_v0 = vadd.f32 0.2548296, %v971_v63  ;;  %1763 = vrcp.f32 %v702_v40  ;;  %v1292_v33 = vsub.f32 0.0, %v1228_v21  ;;  %v814_v24 = vadd.f32 -1.4531521, %v782_v38 }
 0x192   : > { %v1401_v58 = vmul.f32 %v1369_v41, %v2428_v36  ;;  %v891_v62 = vadd.f32 1.4214138, %v859_v43  ;;  %v1244_v44 = vsub.f32 1.0, %v1212_v53  ;;  %vm1276_vm13 = vcmp.lt.f32.partialorder %v2411_v8, 0.0 }
 0x193   : > { %v1035_v54 = vmul.f32 %v2483_v61, %v1003_v0  ;;  %v2547_v15 = vmul.f32 0.70710677, %v2529_v48  ;;  %v1324_v23 = vsel %vm1260_vm12, %v1292_v33, %v1228_v21  ;;  %v846_v46 = vmul.f32 %v2531_v13, %v814_v24 }
 0x194   : > { %1434 = vst.msk [vmem:[%s2075_s4 + $0xd0] sm:$0xff] %vm1407_vm4, %v1401_v58  ;;  %v923_v27 = vmul.f32 %v2519_v9, %v891_v62  ;;  %1765 = vpow2.f32 %v1149_v7  ;;  %v1356_v36 = vadd.f32 1.0, %v1324_v23  ;;  %v1308_v1 = vsub.f32 0.0, %v1244_v44 }
 0x195   : > { %v1195_v34 = vmul.f32 %v1756_v60, %v1035_v54  ;;  %v2554_v35 = vadd.f32 %v2315_v4, %v534_v50  ;;  %v878_v61 = vadd.f32 1.4214138, %v846_v46  ;;  %v621_v20 = vand.u32 2147483647, %v2547_v15 }
 0x196   : > { %v955_v10 = vadd.f32 -0.28449672, %v923_v27  ;;  %v1762_v25 = vpop.eup %1761  ;;  %v1388_v17 = vmul.f32 %v1356_v36, %v2466_v11  ;;  %v1340_v55 = vsel %vm1276_vm13, %v1308_v1, %v1244_v44  ;;  %v1086_v49 = vsub.f32 0.0, %v2517_v59 }
 0x197   : > { %v1227_v57 = vsub.f32 1.0, %v1195_v34  ;;  %v1372_v26 = vadd.f32 1.0, %v1340_v55  ;;  %v910_v4 = vmul.f32 %v2531_v13, %v878_v61  ;;  %v653_v7 = vmul.f32 0.3275911, %v621_v20 }
 0x198   : > { %v987_v60 = vmul.f32 %v2519_v9, %v955_v10  ;;  %1421 = vst.msk [vmem:[%s2075_s4 + $0x68] sm:$0xff] %vm1407_vm4, %v1388_v17  ;;  %vm1259_vm14 = vcmp.lt.f32.partialorder %v2420_v51, 0.0  ;;  %v2567_v11 = vmul.f32 0.70710677, %v2554_v35  ;;  %v555_v16 = vmul.f32 0.5, %v2397_v32 }
 0x199   : > { %v1291_v39 = vsub.f32 0.0, %v1227_v57  ;;  %v1404_v8 = vmul.f32 %v1372_v26, %v2512_v14  ;;  %v942_v52 = vadd.f32 -0.28449672, %v910_v4  ;;  %v685_v2 = vadd.f32 1.0, %v653_v7 }
 0x19a   : > { %v1019_v5 = vadd.f32 0.2548296, %v987_v60  ;;  %v1118_v30 = vmul.f32 %v1086_v49, %v2517_v59  ;;  %v637_v37 = vand.u32 2147483647, %v2567_v11  ;;  %v1069_v53 = vsub.f32 0.0, %v621_v20 }
 0x19b   : > { %v1323_v31 = vsel %vm1259_vm14, %v1291_v39, %v1227_v57  ;;  %1437 = vst.msk [vmem:[%s2075_s4 + $0xe8] sm:$0xff] %vm1407_vm4, %v1404_v8  ;;  %v974_v29 = vmul.f32 %v2531_v13, %v942_v52  ;;  %1767 = vrcp.f32 %v685_v2  ;;  %vm1275_vm15 = vcmp.lt.f32.partialorder %v2447_v42, 0.0 }
 0x19c   : > { %v1355_v51 = vadd.f32 1.0, %v1323_v31  ;;  %v1051_v3 = vmul.f32 %v2519_v9, %v1019_v5  ;;  %v669_v14 = vmul.f32 0.3275911, %v637_v37  ;;  %v1181_v18 = vmul.f32 1.442695, %v1118_v30 }
 0x19d   : > { %v1006_v28 = vadd.f32 0.2548296, %v974_v29  ;;  %v571_v62 = vmul.f32 0.5, %v2437_v19  ;;  %v1101_v54 = vmul.f32 %v1069_v53, %v621_v20  ;;  %vm1262_vm0 = vcmp.lt.f32.partialorder %v2454_v12, 0.0 }
 0x19e   : > { %v1764_v45 = vpop.eup %1763  ;;  %v1387_v40 = vmul.f32 %v1355_v51, %v555_v16  ;;  %v1211_v56 = vmul.f32 %v1762_v25, %v1051_v3  ;;  %v701_v63 = vadd.f32 1.0, %v669_v14  ;;  %v1085_v27 = vsub.f32 0.0, %v637_v37 }
 0x19f   : > { %v798_v32 = vmul.f32 1.0614054, %v1764_v45  ;;  %v1038_v41 = vmul.f32 %v2531_v13, %v1006_v28  ;;  %v558_v42 = vmul.f32 0.5, %v2440_v22  ;;  %v1147_v19 = vmul.f32 1.442695, %v1101_v54 }
 0x1a0   : > { %1420 = vst.msk [vmem:[%s2075_s4 + $0x60] sm:$0xff] %vm1407_vm4, %v1387_v40  ;;  %v1243_v59 = vsub.f32 1.0, %v1211_v56  ;;  %1769 = vrcp.f32 %v701_v63  ;;  %v1117_v17 = vmul.f32 %v1085_v27, %v637_v37  ;;  %vm1278_vm1 = vcmp.lt.f32.partialorder %v2509_v6, 0.0 }
 0x1a1   : > { %v1766_v21 = vpop.eup %1765  ;;  %v830_v43 = vadd.f32 -1.4531521, %v798_v32  ;;  %1771 = vpow2.f32 %v1181_v18  ;;  %v574_v3 = vmul.f32 0.5, %v2495_v47  ;;  %vm1261_vm2 = vcmp.lt.f32.partialorder %v2547_v15, 0.0 }
 0x1a2   : > { %v1307_v9 = vsub.f32 0.0, %v1243_v59  ;;  %v1198_v38 = vmul.f32 %v1766_v21, %v1038_v41  ;;  %1773 = vpow2.f32 %v1147_v19  ;;  %v1179_v60 = vmul.f32 1.442695, %v1117_v17 }
 0x1a3   : > { %v862_v0 = vmul.f32 %v1764_v45, %v830_v43  ;;  %vm1277_vm3 = vcmp.lt.f32.partialorder %v2567_v11, 0.0 }
 0x1a4   : > { %v1339_v58 = vsel %vm1275_vm15, %v1307_v9, %v1243_v59  ;;  %v1230_v33 = vsub.f32 1.0, %v1198_v38  ;;  %1775 = vpow2.f32 %v1179_v60  ;;  %v557_v9 = vmul.f32 0.5, %v2529_v48 }
 0x1a5   : > { %v1371_v24 = vadd.f32 1.0, %v1339_v58  ;;  %v894_v50 = vadd.f32 1.4214138, %v862_v0 }
 0x1a6   : > { %v1294_v44 = vsub.f32 0.0, %v1230_v33 }
 0x1a7   : > { %v1403_v13 = vmul.f32 %v1371_v24, %v571_v62  ;;  %v926_v23 = vmul.f32 %v1764_v45, %v894_v50  ;;  %v573_v62 = vmul.f32 0.5, %v2554_v35 }
 0x1a8   : > { %v1326_v46 = vsel %vm1262_vm0, %v1294_v44, %v1230_v33  ;;  %v1768_v36 = vpop.eup %1767 }
 0x1a9   : > { %1436 = vst.msk [vmem:[%s2075_s4 + $0xe0] sm:$0xff] %vm1407_vm4, %v1403_v13  ;;  %v1358_v1 = vadd.f32 1.0, %v1326_v46  ;;  %v958_v34 = vadd.f32 -0.28449672, %v926_v23  ;;  %v781_v10 = vmul.f32 1.0614054, %v1768_v36 }
 0x1ab   : > { %v1390_v61 = vmul.f32 %v1358_v1, %v558_v42  ;;  %v990_v25 = vmul.f32 %v1764_v45, %v958_v34  ;;  %v813_v20 = vadd.f32 -1.4531521, %v781_v10 }
 0x1ad   : > { %1423 = vst.msk [vmem:[%s2075_s4 + $0x78] sm:$0xff] %vm1407_vm4, %v1390_v61  ;;  %v1022_v55 = vadd.f32 0.2548296, %v990_v25  ;;  %v1770_v12 = vpop.eup %1769  ;;  %v845_v57 = vmul.f32 %v1768_v36, %v813_v20 }
 0x1ae   : > { %v797_v26 = vmul.f32 1.0614054, %v1770_v12  ;;  %v1772_v4 = vpop.eup %1771 }
 0x1af   : > { %v1054_v49 = vmul.f32 %v1764_v45, %v1022_v55  ;;  %v877_v7 = vadd.f32 1.4214138, %v845_v57  ;;  %v1774_v28 = vpop.eup %1773 }
 0x1b0   : > { %v829_v39 = vadd.f32 -1.4531521, %v797_v26 }
 0x1b1   : > { %v1214_v22 = vmul.f32 %v1772_v4, %v1054_v49  ;;  %v909_v8 = vmul.f32 %v1768_v36, %v877_v7  ;;  %v1776_v6 = vpop.eup %1775 }
 0x1b2   : > { %v861_v52 = vmul.f32 %v1770_v12, %v829_v39 }
 0x1b3   : > { %v1246_v5 = vsub.f32 1.0, %v1214_v22  ;;  %v941_v2 = vadd.f32 -0.28449672, %v909_v8 }
 0x1b4   : > { %v893_v31 = vadd.f32 1.4214138, %v861_v52 }
 0x1b5   : > { %v1310_v16 = vsub.f32 0.0, %v1246_v5  ;;  %v973_v30 = vmul.f32 %v1768_v36, %v941_v2 }
 0x1b6   : > { %v925_v51 = vmul.f32 %v1770_v12, %v893_v31 }
 0x1b7   : > { %v1342_v37 = vsel %vm1278_vm1, %v1310_v16, %v1246_v5  ;;  %v1005_v14 = vadd.f32 0.2548296, %v973_v30 }
 0x1b8   : > { %v1374_v29 = vadd.f32 1.0, %v1342_v37  ;;  %v957_v45 = vadd.f32 -0.28449672, %v925_v51 }
 0x1b9   : > { %v1037_v56 = vmul.f32 %v1768_v36, %v1005_v14 }
 0x1ba   : > { %v1406_v40 = vmul.f32 %v1374_v29, %v574_v3  ;;  %v989_v32 = vmul.f32 %v1770_v12, %v957_v45 }
 0x1bb   : > { %v1197_v18 = vmul.f32 %v1774_v28, %v1037_v56 }
 0x1bc   : > { %1439 = vst.msk [vmem:[%s2075_s4 + $0xf8] sm:$0xff] %vm1407_vm4, %v1406_v40  ;;  %v1021_v63 = vadd.f32 0.2548296, %v989_v32 }
 0x1bd   : > { %v1229_v59 = vsub.f32 1.0, %v1197_v18 }
 0x1be   : > { %v1053_v41 = vmul.f32 %v1770_v12, %v1021_v63 }
 0x1bf   : > { %v1293_v21 = vsub.f32 0.0, %v1229_v59 }
 0x1c0   : > { %v1213_v47 = vmul.f32 %v1776_v6, %v1053_v41 }
 0x1c1   : > { %v1325_v43 = vsel %vm1261_vm2, %v1293_v21, %v1229_v59 }
 0x1c2   : > { %v1357_v38 = vadd.f32 1.0, %v1325_v43  ;;  %v1245_v53 = vsub.f32 1.0, %v1213_v47 }
 0x1c4   : > { %v1389_v0 = vmul.f32 %v1357_v38, %v557_v9  ;;  %v1309_v58 = vsub.f32 0.0, %v1245_v53 }
 0x1c6   : > { %1422 = vst.msk [vmem:[%s2075_s4 + $0x70] sm:$0xff] %vm1407_vm4, %v1389_v0  ;;  %v1341_v33 = vsel %vm1277_vm3, %v1309_v58, %v1245_v53 }
 0x1c7   : > { %v1373_v24 = vadd.f32 1.0, %v1341_v33 }
 0x1c9   : > { %v1405_v50 = vmul.f32 %v1373_v24, %v573_v62 }
 0x1cb   : > { %1438 = vst.msk [vmem:[%s2075_s4 + $0xf0] sm:$0xff] %vm1407_vm4, %v1405_v50 }
 0x1cc PF: > { %s13_s12 = sadd.s32 1, %s1784_s12  }
 0x1cd   : > { %p10_p4 = scmp.ge.s32.totalorder %s13_s12, 4  }
 0x1cf   :  { %12 = sbr.rel (!%p10_p4) target bundleno = 1 (0x1), region = 62 }

</bundles_post_ra>
